<compile_context>
chip_gen: v7x
topology: tpu7x:2x2x1
jax: 0.10.0
libtpu: 0.0.40
codegen_flags: <defaults>
</compile_context>

<pallas_src>
import functools

import jax
import jax.numpy as jnp
from jax import lax
from jax.experimental import pallas as pl
from jax.experimental.pallas import tpu as pltpu


_SQRT_2_OVER_PI = 0.7978845608028654
_GELU_C = 2.0 * _SQRT_2_OVER_PI          # fold the sigmoid's 2 into the constant


def _gelu_tanh(x):
    # Exact rewrite of GELU(approximate='tanh'):
    #   0.5*x*(1+tanh(u)) == x*sigmoid(2u),  u = sqrt(2/pi)*(x + 0.044715*x^3)
    u = _GELU_C * (x + 0.044715 * (x * x * x))
    return x / (1.0 + jnp.exp(-u))


def _ffn_compute(x_ref, w1_ref, b1_ref, w2_ref, b2_ref):
    """(tm, n_embed) @ (n_embed, th) -> GELU -> @ (th, n_embed) partial (f32)."""
    x = x_ref[...]
    h = jnp.dot(x, w1_ref[...], preferred_element_type=jnp.float32)
    h = _gelu_tanh(h + b1_ref[...])
    return jnp.dot(h.astype(x.dtype), w2_ref[...],
                   preferred_element_type=jnp.float32)


def ffn_kernel_resident(x_ref, w1_ref, b1_ref, w2_ref, b2_ref, o_ref):
    # Whole hidden dim (and both weights) VMEM-resident -> single pass, no acc.
    # TODO(synk): training-mode dropout would need pltpu.prng_seed +
    # pltpu.prng_random_bits and 1/(1-p) scaling; eval-mode is identity.
    y = _ffn_compute(x_ref, w1_ref, b1_ref, w2_ref, b2_ref) + b2_ref[...]
    o_ref[...] = y.astype(o_ref.dtype)


def ffn_kernel_slabbed(x_ref, w1_ref, b1_ref, w2_ref, b2_ref, o_ref, acc_ref):
    h_idx = pl.program_id(1)

    @pl.when(h_idx == 0)
    def _init():
        acc_ref[...] = jnp.zeros_like(acc_ref)

    acc_ref[...] += _ffn_compute(x_ref, w1_ref, b1_ref, w2_ref, b2_ref)

    @pl.when(h_idx == pl.num_programs(1) - 1)
    def _finalize():
        o_ref[...] = (acc_ref[...] + b2_ref[...]).astype(o_ref.dtype)


def _round_up(x, m):
    return ((x + m - 1) // m) * m


def _pick_tile(dim, pref, align):
    """Largest multiple of `align` <= pref that divides `dim`; else the full dim."""
    if dim % align != 0:
        return dim
    t = min(pref, dim)
    t -= t % align
    while t >= align:
        if dim % t == 0:
            return t
        t -= align
    return dim


def _row_tiling(M, pref):
    """Pick (row_tile, padded_rows).

    The tile divides the 8-aligned row count (so the wrapper pads at most 7
    rows) and is capped so grid axis 0 has >= 2 tiles when that does not force
    a tiny tile (lets v7x's 2 TensorCores both work on small M).
    """
    M8 = _round_up(M, 8)
    pref = max(8, min(pref, M8))
    pref -= pref % 8
    t_full = _pick_tile(M8, pref, 8)
    half = max(8, (M8 // 2) - (M8 // 2) % 8)
    t_half = _pick_tile(M8, min(pref, half), 8)
    tm = t_half if (t_half >= 64 or t_half == t_full) else t_full
    return tm, M8


@functools.partial(jax.jit, static_argnames=("tm", "th", "vmem_limit_bytes"))
def feed_forward(x, w1, b1, w2, b2, *, tm=512, th=512,
                 vmem_limit_bytes=48 * 1024 * 1024):
    """y = GELU_tanh(x @ w1^T + b1) @ w2^T + b2  (dropout = eval identity).

    x: (B, T, n_embed); w1: (hidden, n_embed); b1: (hidden,);
    w2: (n_embed, hidden); b2: (n_embed,)  -- PyTorch nn.Linear layouts.
    tm / th: row / hidden tile preferences (VMEM-capped automatically).
    vmem_limit_bytes: 48 MiB default is v7x-safe; raise on v5e/v6e for bigger tm.
    """
    B, T, n_embed = x.shape
    hidden = w1.shape[0]
    M = B * T
    itemsize = jnp.dtype(x.dtype).itemsize

    # One-time transpose into (in, out) layout: in-kernel contractions become
    # ((1,),(0,)) -- no repeated weight transpose inside the kernel.
    w1t = w1.T                      # (n_embed, hidden)
    w2t = w2.T                      # (hidden, n_embed)
    b1r = b1.reshape(1, hidden)
    b2r = b2.reshape(1, n_embed)

    budget = int(0.7 * vmem_limit_bytes)
    weight_bytes = 2 * n_embed * hidden * itemsize

    # Resident path if (conservatively double-buffered) weights + modest row
    # tiles + the f32 intermediate fit the budget.
    resident = (2 * weight_bytes + 4 * 256 * n_embed * itemsize
                + 256 * hidden * 4) <= budget

    if resident:
        th_eff = hidden
        fixed = 2 * weight_bytes
        per_row = 4 * n_embed * itemsize + 4 * hidden        # x/out dbl-buf + f32 h
    else:
        align_h = 256 if hidden % 256 == 0 else 128          # feed 256x256 MXU
        th_eff = _pick_tile(hidden, th, align_h)
        fixed = 4 * n_embed * th_eff * itemsize               # W1/W2 slabs, dbl-buf
        per_row = (4 * n_embed * itemsize                     # x/out dbl-buf
                   + 4 * n_embed                              # f32 accumulator
                   + 4 * th_eff)                              # f32 h slab

    tm_max = max(8, (budget - fixed) // max(per_row, 1))
    tm_eff, M_pad = _row_tiling(M, min(tm, tm_max))
    n_row_tiles = M_pad // tm_eff

    x2d = x.reshape(M, n_embed)
    if M_pad != M:
        # Pads at most 7 rows; padded rows compute garbage and are sliced off.
        x2d = jnp.pad(x2d, ((0, M_pad - M), (0, 0)))

    weight_reads = 1 if resident else n_row_tiles
    cost = pl.CostEstimate(
        flops=4 * M_pad * n_embed * hidden,
        transcendentals=M_pad * hidden,
        bytes_accessed=itemsize * (2 * M_pad * n_embed
                                   + weight_reads * 2 * n_embed * hidden
                                   + hidden + n_embed),
    )

    if resident:
        grid = (n_row_tiles,)
        in_specs = [
            pl.BlockSpec((tm_eff, n_embed), lambda i: (i, 0)),    # x rows
            pl.BlockSpec((n_embed, hidden), lambda i: (0, 0)),    # W1^T (resident)
            pl.BlockSpec((1, hidden), lambda i: (0, 0)),          # b1
            pl.BlockSpec((hidden, n_embed), lambda i: (0, 0)),    # W2^T (resident)
            pl.BlockSpec((1, n_embed), lambda i: (0, 0)),         # b2
        ]
        out_spec = pl.BlockSpec((tm_eff, n_embed), lambda i: (i, 0))
        kernel = ffn_kernel_resident
        scratch = []
        dims = ("parallel",)
    else:
        grid = (n_row_tiles, hidden // th_eff)
        in_specs = [
            pl.BlockSpec((tm_eff, n_embed), lambda i, h: (i, 0)),  # x rows
            pl.BlockSpec((n_embed, th_eff), lambda i, h: (0, h)),  # W1^T slab
            pl.BlockSpec((1, th_eff), lambda i, h: (0, h)),        # b1 slab
            pl.BlockSpec((th_eff, n_embed), lambda i, h: (h, 0)),  # W2^T slab
            pl.BlockSpec((1, n_embed), lambda i, h: (0, 0)),       # b2
        ]
        out_spec = pl.BlockSpec((tm_eff, n_embed), lambda i, h: (i, 0))
        kernel = ffn_kernel_slabbed
        scratch = [pltpu.VMEM((tm_eff, n_embed), jnp.float32)]
        dims = ("parallel", "arbitrary")

    out2d = pl.pallas_call(
        kernel,
        out_shape=jax.ShapeDtypeStruct((M_pad, n_embed), x.dtype),
        grid_spec=pltpu.PrefetchScalarGridSpec(
            num_scalar_prefetch=0,
            grid=grid,
            in_specs=in_specs,
            out_specs=out_spec,
            scratch_shapes=scratch,
        ),
        compiler_params=pltpu.CompilerParams(
            dimension_semantics=dims,
            vmem_limit_bytes=vmem_limit_bytes,
        ),
        cost_estimate=cost,
    )(x2d, w1t, b1r, w2t, b2r)

    if M_pad != M:
        out2d = out2d[:M]
    return out2d.reshape(B, T, n_embed)


def _reference(x, w1, b1, w2, b2):
    h = jnp.einsum("btd,hd->bth", x, w1, precision=lax.Precision.HIGHEST) + b1
    h = 0.5 * h * (1.0 + jnp.tanh(_SQRT_2_OVER_PI * (h + 0.044715 * h ** 3)))
    return jnp.einsum("bth,dh->btd", h, w2, precision=lax.Precision.HIGHEST) + b2


if __name__ == "__main__":
    # cfg: n_embed=128, mlp_ratio=4 -> hidden=512, dropout (eval => identity).
    n_embed, mlp_ratio = 128, 4
    hidden = mlp_ratio * n_embed
    B, T = 2, 128                       # M = 256

    key = jax.random.PRNGKey(0)
    kx, k1, kb1, k2, kb2 = jax.random.split(key, 5)

    x = jax.random.normal(kx, (B, T, n_embed), dtype=jnp.float32)

    # Deterministic init mimicking nn.Linear default (uniform +-1/sqrt(fan_in)).
    bound1 = 1.0 / (n_embed ** 0.5)
    w1 = jax.random.uniform(k1, (hidden, n_embed), jnp.float32, -bound1, bound1)
    b1 = jax.random.uniform(kb1, (hidden,), jnp.float32, -bound1, bound1)
    bound2 = 1.0 / (hidden ** 0.5)
    w2 = jax.random.uniform(k2, (n_embed, hidden), jnp.float32, -bound2, bound2)
    b2 = jax.random.uniform(kb2, (n_embed,), jnp.float32, -bound2, bound2)

    # Tolerance covers the MXU's default-precision f32 matmul passes vs. the
    # HIGHEST-precision reference (actual error is typically far smaller).
    TOL = 1e-2

    # 1) Weight-resident fast path (weights fit VMEM -> single-pass kernel,
    #    2 row tiles so both v7x TensorCores get work).
    out = jax.block_until_ready(feed_forward(x, w1, b1, w2, b2))
    ref = _reference(x, w1, b1, w2, b2)
    assert out.shape == (B, T, n_embed)
    err = float(jnp.max(jnp.abs(out - ref)))
    assert err < TOL, err

    # 2) Ragged row count (M = 100, not a multiple of 8) -> 8-row padding path.
    B2, T2 = 2, 50
    x2 = jax.random.normal(kx, (B2, T2, n_embed), dtype=jnp.float32)
    out2 = jax.block_until_ready(feed_forward(x2, w1, b1, w2, b2))
    ref2 = _reference(x2, w1, b1, w2, b2)
    assert out2.shape == (B2, T2, n_embed)
    err2 = float(jnp.max(jnp.abs(out2 - ref2)))
    assert err2 < TOL, err2

    # 3) Slabbed accumulator path: tiny VMEM budget forces hidden tiling
    #    (2 hidden slabs x 2 row tiles, f32 scratch accumulator exercised).
    out3 = jax.block_until_ready(
        feed_forward(x, w1, b1, w2, b2, th=256, vmem_limit_bytes=2 * 1024 * 1024))
    err3 = float(jnp.max(jnp.abs(out3 - ref)))
    assert out3.shape == (B, T, n_embed)
    assert err3 < TOL, err3

    print("KERNEL_OK")
</pallas_src>

<mosaic_0001>
module attributes {stable_mosaic.version = 11 : i64} {
  func.func @ffn_kernel_resident(%arg0: i32, %arg1: memref<128x128xf32, #tpu.memory_space<vmem>>, %arg2: memref<128x512xf32, #tpu.memory_space<vmem>>, %arg3: memref<1x512xf32, #tpu.memory_space<vmem>>, %arg4: memref<512x128xf32, #tpu.memory_space<vmem>>, %arg5: memref<1x128xf32, #tpu.memory_space<vmem>>, %arg6: memref<128x128xf32, #tpu.memory_space<vmem>>) attributes {dimension_semantics = [#tpu.dimension_semantics<parallel>], iteration_bounds = array<i64: 2>, scalar_prefetch = 0 : i64, scratch_operands = 0 : i64, tpu.core_type = #tpu.core_type<tc>, window_params = [{transform_indices = @transform_0, window_bounds = array<i64: 128, 128>}, {pipeline_mode = #tpu.pipeline_mode<synchronous>, transform_indices = @transform_1, window_bounds = array<i64: 128, 512>}, {pipeline_mode = #tpu.pipeline_mode<synchronous>, transform_indices = @transform_2, window_bounds = array<i64: 1, 512>}, {pipeline_mode = #tpu.pipeline_mode<synchronous>, transform_indices = @transform_3, window_bounds = array<i64: 512, 128>}, {pipeline_mode = #tpu.pipeline_mode<synchronous>, transform_indices = @transform_4, window_bounds = array<i64: 1, 128>}, {transform_indices = @transform_5, window_bounds = array<i64: 128, 128>}]} {
    %c0 = arith.constant 0 : index
    %c0_0 = arith.constant 0 : index
    %0 = vector.load %arg1[%c0, %c0_0] : memref<128x128xf32, #tpu.memory_space<vmem>>, vector<128x128xf32>
    %c0_1 = arith.constant 0 : index
    %c0_2 = arith.constant 0 : index
    %1 = vector.load %arg2[%c0_1, %c0_2] : memref<128x512xf32, #tpu.memory_space<vmem>>, vector<128x512xf32>
    %cst = arith.constant dense<0.000000e+00> : vector<128x512xf32>
    %2 = tpu.matmul %0, %1, %cst {dimension_numbers = #tpu.dot_dimension_numbers<[1], [0], [0], [1], [0, 0, 1, 1], [], []>} : vector<128x128xf32>, vector<128x512xf32>, vector<128x512xf32> -> vector<128x512xf32>
    %c0_3 = arith.constant 0 : index
    %c0_4 = arith.constant 0 : index
    %3 = vector.load %arg3[%c0_3, %c0_4] : memref<1x512xf32, #tpu.memory_space<vmem>>, vector<1x512xf32>
    %4 = vector.broadcast %3 : vector<1x512xf32> to vector<128x512xf32>
    %5 = arith.addf %2, %4 : vector<128x512xf32>
    %6 = arith.mulf %5, %5 : vector<128x512xf32>
    %7 = arith.mulf %6, %5 : vector<128x512xf32>
    %cst_5 = arith.constant 4.471500e-02 : f32
    %8 = vector.broadcast %cst_5 : f32 to vector<128x512xf32>
    %9 = arith.mulf %8, %7 : vector<128x512xf32>
    %10 = arith.addf %5, %9 : vector<128x512xf32>
    %cst_6 = arith.constant 1.59576917 : f32
    %11 = vector.broadcast %cst_6 : f32 to vector<128x512xf32>
    %12 = arith.mulf %11, %10 : vector<128x512xf32>
    %cst_7 = arith.constant 0.000000e+00 : f32
    %13 = vector.broadcast %cst_7 : f32 to vector<128x512xf32>
    %14 = arith.subf %13, %12 : vector<128x512xf32>
    %15 = math.exp %14 : vector<128x512xf32>
    %cst_8 = arith.constant 1.000000e+00 : f32
    %16 = vector.broadcast %cst_8 : f32 to vector<128x512xf32>
    %17 = arith.addf %16, %15 : vector<128x512xf32>
    %18 = arith.divf %5, %17 : vector<128x512xf32>
    %c0_9 = arith.constant 0 : index
    %c0_10 = arith.constant 0 : index
    %19 = vector.load %arg4[%c0_9, %c0_10] : memref<512x128xf32, #tpu.memory_space<vmem>>, vector<512x128xf32>
    %cst_11 = arith.constant dense<0.000000e+00> : vector<128x128xf32>
    %20 = tpu.matmul %18, %19, %cst_11 {dimension_numbers = #tpu.dot_dimension_numbers<[1], [0], [0], [1], [0, 0, 1, 1], [], []>} : vector<128x512xf32>, vector<512x128xf32>, vector<128x128xf32> -> vector<128x128xf32>
    %c0_12 = arith.constant 0 : index
    %c0_13 = arith.constant 0 : index
    %21 = vector.load %arg5[%c0_12, %c0_13] : memref<1x128xf32, #tpu.memory_space<vmem>>, vector<1x128xf32>
    %22 = vector.broadcast %21 : vector<1x128xf32> to vector<128x128xf32>
    %23 = arith.addf %20, %22 : vector<128x128xf32>
    %c0_14 = arith.constant 0 : index
    %c0_15 = arith.constant 0 : index
    %24 = vector.load %arg6[%c0_14, %c0_15] : memref<128x128xf32, #tpu.memory_space<vmem>>, vector<128x128xf32>
    tpu.vector_store %arg6[%c0_14, %c0_15], %23 {strides = array<i32>} : memref<128x128xf32, #tpu.memory_space<vmem>>, vector<128x128xf32>,
    return
  }
  func.func @transform_0(%arg0: i32) -> (i32, i32) {
    %c0_i32 = arith.constant 0 : i32
    %c0_i32_0 = arith.constant 0 : i32
    return %arg0, %c0_i32 : i32, i32
  }
  func.func @transform_1(%arg0: i32) -> (i32, i32) {
    %c0_i32 = arith.constant 0 : i32
    %c0_i32_0 = arith.constant 0 : i32
    %c0_i32_1 = arith.constant 0 : i32
    return %c0_i32, %c0_i32_0 : i32, i32
  }
  func.func @transform_2(%arg0: i32) -> (i32, i32) {
    %c0_i32 = arith.constant 0 : i32
    %c0_i32_0 = arith.constant 0 : i32
    %c0_i32_1 = arith.constant 0 : i32
    return %c0_i32, %c0_i32_0 : i32, i32
  }
  func.func @transform_3(%arg0: i32) -> (i32, i32) {
    %c0_i32 = arith.constant 0 : i32
    %c0_i32_0 = arith.constant 0 : i32
    %c0_i32_1 = arith.constant 0 : i32
    return %c0_i32, %c0_i32_0 : i32, i32
  }
  func.func @transform_4(%arg0: i32) -> (i32, i32) {
    %c0_i32 = arith.constant 0 : i32
    %c0_i32_0 = arith.constant 0 : i32
    %c0_i32_1 = arith.constant 0 : i32
    return %c0_i32, %c0_i32_0 : i32, i32
  }
  func.func @transform_5(%arg0: i32) -> (i32, i32) {
    %c0_i32 = arith.constant 0 : i32
    %c0_i32_0 = arith.constant 0 : i32
    return %arg0, %c0_i32 : i32, i32
  }
}

</mosaic_0001>

<bundles_post_ra>
// kernel: feed_forward.1
= control target key start
LH: loop header
LB: loop body
LE: loop exit
PB: predicated region body
PF: predicated region fallthrough
CT: control target
= control target key end

     0   :  { %10 = vsyncpa [#allocation3], 0  ;;  %s3918_s0 = inlined_call_operand.vmem [shape: f32[256,128], index: 0, kind: input, shape index: {}]   ;;  %s3919_s1 = inlined_call_operand.vmem [shape: f32[128,512], index: 1, kind: input, shape index: {}]   ;;  %s3920_s2 = inlined_call_operand.vmem [shape: f32[1,512], index: 2, kind: input, shape index: {}]   ;;  %s3921_s3 = inlined_call_operand.vmem [shape: f32[512,128], index: 3, kind: input, shape index: {}]   ;;  %s3922_s4 = inlined_call_operand.vmem [shape: f32[1,128], index: 4, kind: input, shape index: {}]   ;;  %s3923_s5 = inlined_call_operand.hbm [shape: f32[256,128], index: 5, kind: output, shape index: {}]  }
   0x1   :  { %12 = vsyncpa [#allocation3 + $0x1], 0  ;;  %s2505_s18 = smov 0   ;;  %s2507_s19 = smov 0  }
   0x2   :  { %s2509_s20 = smov 0   ;;  %s2511_s21 = smov 0  }
   0x3 LB: > { %s2526_s22 = sadd.s32 4294967295, %s2469_s21   ;;  %s1807_s23 = sadd.s32 4294967294, %s2469_s21   ;;  %s2469_s21 = sphi %s2511_s21, %s4129_s21   ;;  %s2465_s20 = sphi %s2509_s20, %s4128_s20   ;;  %s2461_s19 = sphi %s2507_s19, %s4127_s19   ;;  %s2457_s18 = sphi %s2505_s18, %s4126_s18  }
   0x4   : > { %s2530_s24 = sadd.s32 1, %s2469_s21   ;;  %s135_s25 = sadd.s32 1, %s2465_s20 }
   0x5   : > { %s132_s26 = ssub.s32 %s2469_s21, %s2530_s24  ;;  %p145_p0 = scmp.ne.s32.totalorder %s2465_s20, %s2461_s19 }
   0x6   : > { %p133_p1 = scmp.eq.s32.totalorder %s132_s26, 0  ;;  %p146_p2 = scmp.eq.s32.totalorder %s2526_s22, 1 }
   0x7   : > { %p151_p3 = scmp.ne.s32.totalorder %s2461_s19, %s2457_s18  ;;  %p152_p4 = scmp.eq.s32.totalorder %s1807_s23, 1 }
   0x8   : > { %s2541_s27 = scalar_select %p133_p1, %s2465_s20, %s135_s25  }
   0x9   : > { %p2543_p5 = por %p146_p2, %p145_p0  ;;  %p2547_p6 = por %p152_p4, %p151_p3 }
   0xa   : > { %p1810_p7 = scmp.ge.s32.totalorder %s2469_s21, 1  ;;  %p191_p8 = scmp.lt.s32.totalorder %s2469_s21, 3 }
   0xc   : > { %p192_p9 = pnand %p1810_p7, %p191_p8 }
   0xe   : > { %195 = sbr.rel (%p192_p9) target bundleno = 716 (0x2cc), region = 40 }
  0x15   : > { %v243_v0 = vld [vmem:[%s3919_s1 + $0x8] sm:$0xff]  ;;  %v245_v2 = vld [vmem:[%s3919_s1 + $0x18] sm:$0xff]  ;;  %v242_v5 = vld [vmem:[%s3919_s1] sm:$0xff]  ;;  %v2471_v7 = vmov 0.0   ;;  %s1812_s13 = sshll.u32 %s2526_s22, 4  ;;  %s216_s25 = sand.u32 1, %s2461_s19  }
  0x16   : > { %v247_v1 = vld [vmem:[%s3919_s1 + $0x28] sm:$0xff]  ;;  %v249_v4 = vld [vmem:[%s3919_s1 + $0x38] sm:$0xff]  ;;  %v246_v6 = vld [vmem:[%s3919_s1 + $0x20] sm:$0xff]  ;;  %392 = vmatprep.mubr.f32.mxu0 %v2471_v7  ;;  %553 = vmatprep.mubr.f32.mxu1 %v2471_v7  ;;  %p2708_p10 = scmp.lt.s32.totalorder %s1812_s13, 31  ;;  %s1811_s30 = sshll.u32 %s216_s25, 7 }
  0x17   : > { %v1981_v3 = vpack.c.bf16 %v247_v1, %v243_v0  ;;  %v2013_v8 = vpack.c.bf16 %v249_v4, %v245_v2  ;;  %v1983_v9 = vpack.c.bf16 %v246_v6, %v242_v5  ;;  %v244_v10 = vld [vmem:[%s3919_s1 + $0x10] sm:$0xff]  ;;  %v251_v12 = vld [vmem:[%s3919_s1 + $0x48] sm:$0xff]  ;;  %v253_v15 = vld [vmem:[%s3919_s1 + $0x58] sm:$0xff]  ;;  %s3833_s6 = scalar_lea.vmem [#allocation2], %s1811_s30  ;;  %s1820_s7 = sshll.u32 %s2526_s22, 11 }
  0x18   : > { %v248_v11 = vld [vmem:[%s3919_s1 + $0x30] sm:$0xff]  ;;  %v255_v14 = vld [vmem:[%s3919_s1 + $0x68] sm:$0xff]  ;;  %v257_v16 = vld [vmem:[%s3919_s1 + $0x78] sm:$0xff]  ;;  %s4131_s13 = smov (!%p2708_p10, %s1812_s13), 31  ;;  %s3870_s12 = scalar_lea.hbm %s3923_s5, %s1820_s7 }
  0x19   : > { %1982 = vmatprep.subr.bf16.mxu0 %v1981_v3  ;;  %v2015_v13 = vpack.c.bf16 %v248_v11, %v244_v10  ;;  %2014 = vmatprep.subr.bf16.mxu1 %v2013_v8  ;;  %v1985_v17 = vpack.c.bf16 %v255_v14, %v251_v12  ;;  %v2017_v18 = vpack.c.bf16 %v257_v16, %v253_v15  ;;  %v250_v19 = vld [vmem:[%s3919_s1 + $0x40] sm:$0xff]  ;;  %v252_v21 = vld [vmem:[%s3919_s1 + $0x50] sm:$0xff]  ;;  %v259_v24 = vld [vmem:[%s3919_s1 + $0x88] sm:$0xff]  ;;  %s1813_s9 = sshll.u32 %s4131_s13, 3  ;;  %s3877_s14 = scalar_lea.sflag [#allocation3], %s216_s25 }
  0x1a   : > { %1984 = vmatpush1.bf16.msra.mxu0 %v1983_v9  ;;  %v254_v20 = vld [vmem:[%s3919_s1 + $0x60] sm:$0xff]  ;;  %v256_v23 = vld [vmem:[%s3919_s1 + $0x70] sm:$0xff]  ;;  %v263_v25 = vld [vmem:[%s3919_s1 + $0xa8] sm:$0xff]  ;;  %s2773_s26 = scalar_lea.vmem %s3918_s0, %s1813_s9  ;;  %s2472_s15 = smov [#allocation2]  }
  0x1b   : > { %2016 = vmatpush1.bf16.msra.mxu1 %v2015_v13  ;;  %v1987_v22 = vpack.c.bf16 %v254_v20, %v250_v19  ;;  %1986 = vmatprep.subr.bf16.mxu0 %v1985_v17  ;;  %v2019_v26 = vpack.c.bf16 %v256_v23, %v252_v21  ;;  %v1989_v27 = vpack.c.bf16 %v263_v25, %v259_v24  ;;  %v261_v28 = vld [vmem:[%s3919_s1 + $0x98] sm:$0xff]  ;;  %v258_v30 = vld [vmem:[%s3919_s1 + $0x80] sm:$0xff]  ;;  %v260_v33 = vld [vmem:[%s3919_s1 + $0x90] sm:$0xff]  ;;  %s2411_s9 = sshll.u32 %s2472_s15, 4  ;;  %s2412_s9 = int_to_ptr.vmem [resolvable:$false] %s2411_s9 }
  0x1c   : > { %2018 = vmatprep.subr.bf16.mxu1 %v2017_v18  ;;  %v265_v29 = vld [vmem:[%s3919_s1 + $0xb8] sm:$0xff]  ;;  %v262_v32 = vld [vmem:[%s3919_s1 + $0xa0] sm:$0xff]  ;;  %v264_v34 = vld [vmem:[%s3919_s1 + $0xb0] sm:$0xff]  ;;  %s2413_s16 = scalar_lea.vmem %s2412_s9, 4096 }
  0x1d   : > { %v2021_v31 = vpack.c.bf16 %v265_v29, %v261_v28  ;;  %v1991_v35 = vpack.c.bf16 %v262_v32, %v258_v30  ;;  %v267_v36 = vld [vmem:[%s3919_s1 + $0xc8] sm:$0xff]  ;;  %v269_v38 = vld [vmem:[%s3919_s1 + $0xd8] sm:$0xff]  ;;  %v2023_v39 = vpack.c.bf16 %v264_v34, %v260_v33  ;;  %v266_v42 = vld [vmem:[%s3919_s1 + $0xc0] sm:$0xff] }
  0x1e   : > { %1988 = vmatpush1.bf16.msra.mxu0 %v1987_v22  ;;  %v271_v37 = vld [vmem:[%s3919_s1 + $0xe8] sm:$0xff]  ;;  %v273_v41 = vld [vmem:[%s3919_s1 + $0xf8] sm:$0xff]  ;;  %v270_v43 = vld [vmem:[%s3919_s1 + $0xe0] sm:$0xff] }
  0x1f   : > { %2020 = vmatpush1.bf16.msra.mxu1 %v2019_v26  ;;  %1990 = vmatprep.subr.bf16.mxu0 %v1989_v27  ;;  %v1993_v40 = vpack.c.bf16 %v271_v37, %v267_v36  ;;  %v2025_v44 = vpack.c.bf16 %v273_v41, %v269_v38  ;;  %v268_v45 = vld [vmem:[%s3919_s1 + $0xd0] sm:$0xff]  ;;  %v275_v47 = vld [vmem:[%s3919_s1 + $0x108] sm:$0xff]  ;;  %v277_v49 = vld [vmem:[%s3919_s1 + $0x118] sm:$0xff]  ;;  %v1995_v51 = vpack.c.bf16 %v270_v43, %v266_v42 }
  0x20   : > { %2022 = vmatprep.subr.bf16.mxu1 %v2021_v31  ;;  %v272_v46 = vld [vmem:[%s3919_s1 + $0xf0] sm:$0xff]  ;;  %v279_v48 = vld [vmem:[%s3919_s1 + $0x128] sm:$0xff]  ;;  %v281_v50 = vld [vmem:[%s3919_s1 + $0x138] sm:$0xff] }
  0x21   : > { %v2027_v52 = vpack.c.bf16 %v272_v46, %v268_v45  ;;  %v1997_v53 = vpack.c.bf16 %v279_v48, %v275_v47  ;;  %v274_v54 = vld [vmem:[%s3919_s1 + $0x100] sm:$0xff]  ;;  %v276_v56 = vld [vmem:[%s3919_s1 + $0x110] sm:$0xff]  ;;  %v2029_v57 = vpack.c.bf16 %v281_v50, %v277_v49  ;;  %v283_v59 = vld [vmem:[%s3919_s1 + $0x148] sm:$0xff] }
  0x22   : > { %1992 = vmatpush1.bf16.msra.mxu0 %v1991_v35  ;;  %v278_v55 = vld [vmem:[%s3919_s1 + $0x120] sm:$0xff]  ;;  %v280_v58 = vld [vmem:[%s3919_s1 + $0x130] sm:$0xff]  ;;  %v287_v60 = vld [vmem:[%s3919_s1 + $0x168] sm:$0xff] }
  0x23   : > { %2024 = vmatpush1.bf16.msra.mxu1 %v2023_v39  ;;  %1994 = vmatprep.subr.bf16.mxu0 %v1993_v40  ;;  %v285_v61 = vld [vmem:[%s3919_s1 + $0x158] sm:$0xff]  ;;  %v1999_v63 = vpack.c.bf16 %v278_v55, %v274_v54  ;;  %v2031_v0 = vpack.c.bf16 %v280_v58, %v276_v56  ;;  %v2001_v1 = vpack.c.bf16 %v287_v60, %v283_v59  ;;  %v282_v2 = vld [vmem:[%s3919_s1 + $0x140] sm:$0xff]  ;;  %v284_v4 = vld [vmem:[%s3919_s1 + $0x150] sm:$0xff] }
  0x24   : > { %2026 = vmatprep.subr.bf16.mxu1 %v2025_v44  ;;  %v289_v62 = vld [vmem:[%s3919_s1 + $0x178] sm:$0xff]  ;;  %v286_v3 = vld [vmem:[%s3919_s1 + $0x160] sm:$0xff]  ;;  %v288_v6 = vld [vmem:[%s3919_s1 + $0x170] sm:$0xff] }
  0x25   : > { %v2033_v5 = vpack.c.bf16 %v289_v62, %v285_v61  ;;  %v291_v8 = vld [vmem:[%s3919_s1 + $0x188] sm:$0xff]  ;;  %v293_v10 = vld [vmem:[%s3919_s1 + $0x198] sm:$0xff]  ;;  %v2003_v12 = vpack.c.bf16 %v286_v3, %v282_v2  ;;  %v2035_v13 = vpack.c.bf16 %v288_v6, %v284_v4  ;;  %v290_v15 = vld [vmem:[%s3919_s1 + $0x180] sm:$0xff] }
  0x26   : > { %1996 = vmatpush1.bf16.msra.mxu0 %v1995_v51  ;;  %v295_v9 = vld [vmem:[%s3919_s1 + $0x1a8] sm:$0xff]  ;;  %v297_v11 = vld [vmem:[%s3919_s1 + $0x1b8] sm:$0xff]  ;;  %v294_v16 = vld [vmem:[%s3919_s1 + $0x1a0] sm:$0xff] }
  0x27   : > { %2028 = vmatpush1.bf16.msra.mxu1 %v2027_v52  ;;  %1998 = vmatprep.subr.bf16.mxu0 %v1997_v53  ;;  %v2005_v14 = vpack.c.bf16 %v295_v9, %v291_v8  ;;  %v292_v17 = vld [vmem:[%s3919_s1 + $0x190] sm:$0xff]  ;;  %v2037_v18 = vpack.c.bf16 %v297_v11, %v293_v10  ;;  %v299_v20 = vld [vmem:[%s3919_s1 + $0x1c8] sm:$0xff]  ;;  %v301_v22 = vld [vmem:[%s3919_s1 + $0x1d8] sm:$0xff]  ;;  %v2007_v24 = vpack.c.bf16 %v294_v16, %v290_v15 }
  0x28   : > { %2030 = vmatprep.subr.bf16.mxu1 %v2029_v57  ;;  %v296_v19 = vld [vmem:[%s3919_s1 + $0x1b0] sm:$0xff]  ;;  %v303_v21 = vld [vmem:[%s3919_s1 + $0x1e8] sm:$0xff]  ;;  %v305_v23 = vld [vmem:[%s3919_s1 + $0x1f8] sm:$0xff] }
  0x29   : > { %v2039_v25 = vpack.c.bf16 %v296_v19, %v292_v17  ;;  %v2009_v26 = vpack.c.bf16 %v303_v21, %v299_v20  ;;  %v298_v27 = vld [vmem:[%s3919_s1 + $0x1c0] sm:$0xff]  ;;  %v2041_v29 = vpack.c.bf16 %v305_v23, %v301_v22  ;;  %v300_v30 = vld [vmem:[%s3919_s1 + $0x1d0] sm:$0xff]  ;;  %v1371_v33 = vld [vmem:[%s3921_s3 + $0x88] sm:$0xff] }
  0x2a   : > { %2000 = vmatpush1.bf16.msra.mxu0 %v1999_v63  ;;  %v302_v28 = vld [vmem:[%s3919_s1 + $0x1e0] sm:$0xff]  ;;  %v304_v31 = vld [vmem:[%s3919_s1 + $0x1f0] sm:$0xff]  ;;  %v1403_v36 = vld [vmem:[%s3921_s3 + $0x188] sm:$0xff] }
  0x2b   : > { %2032 = vmatpush1.bf16.msra.mxu1 %v2031_v0  ;;  %2002 = vmatprep.subr.bf16.mxu0 %v2001_v1  ;;  %v1370_v32 = vld [vmem:[%s3921_s3 + $0x80] sm:$0xff]  ;;  %v2011_v34 = vpack.c.bf16 %v302_v28, %v298_v27  ;;  %v2043_v37 = vpack.c.bf16 %v304_v31, %v300_v30  ;;  %v1355_v40 = vld [vmem:[%s3921_s3 + $0x8] sm:$0xff]  ;;  %v1372_v44 = vld [vmem:[%s3921_s3 + $0x90] sm:$0xff] }
  0x2c   : > { %2034 = vmatprep.subr.bf16.mxu1 %v2033_v5  ;;  %v1402_v35 = vld [vmem:[%s3921_s3 + $0x180] sm:$0xff]  ;;  %v2045_v38 = vpack.c.bf16 %v1371_v33, %v1370_v32  ;;  %v1387_v43 = vld [vmem:[%s3921_s3 + $0x108] sm:$0xff]  ;;  %v1373_v45 = vld [vmem:[%s3921_s3 + $0x98] sm:$0xff] }
  0x2d   : > { %v1354_v39 = vld [vmem:[%s3921_s3] sm:$0xff]  ;;  %v2077_v41 = vpack.c.bf16 %v1403_v36, %v1402_v35  ;;  %v1404_v47 = vld [vmem:[%s3921_s3 + $0x190] sm:$0xff]  ;;  %v1405_v48 = vld [vmem:[%s3921_s3 + $0x198] sm:$0xff]  ;;  %v2049_v51 = vpack.c.bf16 %v1373_v45, %v1372_v44 }
  0x2e   : > { %2004 = vmatpush1.bf16.msra.mxu0 %v2003_v12  ;;  %v1386_v42 = vld [vmem:[%s3921_s3 + $0x100] sm:$0xff]  ;;  %v2047_v49 = vpack.c.bf16 %v1355_v40, %v1354_v39  ;;  %v1356_v52 = vld [vmem:[%s3921_s3 + $0x10] sm:$0xff]  ;;  %v1357_v53 = vld [vmem:[%s3921_s3 + $0x18] sm:$0xff]  ;;  %v2081_v55 = vpack.c.bf16 %v1405_v48, %v1404_v47 }
  0x2f   : > { %2036 = vmatpush1.bf16.msra.mxu1 %v2035_v13  ;;  %2006 = vmatprep.subr.bf16.mxu0 %v2005_v14  ;;  %v226_v46 = vld [vmem:[%s2773_s26] sm:$0xff]  ;;  %v2079_v50 = vpack.c.bf16 %v1387_v43, %v1386_v42  ;;  %v1388_v54 = vld [vmem:[%s3921_s3 + $0x110] sm:$0xff]  ;;  %v1389_v56 = vld [vmem:[%s3921_s3 + $0x118] sm:$0xff]  ;;  %v2051_v62 = vpack.c.bf16 %v1357_v53, %v1356_v52 }
  0x30   : > { %2038 = vmatprep.subr.bf16.mxu1 %v2037_v18  ;;  %v1374_v57 = vld [vmem:[%s3921_s3 + $0xa0] sm:$0xff]  ;;  %v1375_v58 = vld [vmem:[%s3921_s3 + $0xa8] sm:$0xff]  ;;  %v2083_v63 = vpack.c.bf16 %v1389_v56, %v1388_v54  ;;  %v228_v6 = vld [vmem:[%s2773_s26 + $0x10] sm:$0xff] }
  0x31   : > { %v227_v59 = vld [vmem:[%s2773_s26 + $0x8] sm:$0xff]  ;;  %v1406_v60 = vld [vmem:[%s3921_s3 + $0x1a0] sm:$0xff]  ;;  %v2053_v0 = vpack.c.bf16 %v1375_v58, %v1374_v57  ;;  %v229_v10 = vld [vmem:[%s2773_s26 + $0x18] sm:$0xff] }
  0x32   : > { %2008 = vmatpush1.bf16.msra.mxu0 %v2007_v24  ;;  %v1407_v61 = vld [vmem:[%s3921_s3 + $0x1a8] sm:$0xff]  ;;  %v1358_v1 = vld [vmem:[%s3921_s3 + $0x20] sm:$0xff]  ;;  %v232_v13 = vld [vmem:[%s2773_s26 + $0x30] sm:$0xff] }
  0x33   : > { %2040 = vmatpush1.bf16.msra.mxu1 %v2039_v25  ;;  %2010 = vmatprep.subr.bf16.mxu0 %v2009_v26  ;;  %v1359_v2 = vld [vmem:[%s3921_s3 + $0x28] sm:$0xff]  ;;  %v2085_v3 = vpack.c.bf16 %v1407_v61, %v1406_v60  ;;  %v1390_v4 = vld [vmem:[%s3921_s3 + $0x120] sm:$0xff]  ;;  %v233_v14 = vld [vmem:[%s2773_s26 + $0x38] sm:$0xff] }
  0x34   : > { %2042 = vmatprep.subr.bf16.mxu1 %v2041_v29  ;;  %v1391_v5 = vld [vmem:[%s3921_s3 + $0x128] sm:$0xff]  ;;  %v2055_v8 = vpack.c.bf16 %v1359_v2, %v1358_v1  ;;  %v230_v11 = vld [vmem:[%s2773_s26 + $0x20] sm:$0xff]  ;;  %v236_v17 = vld [vmem:[%s2773_s26 + $0x50] sm:$0xff] }
  0x35   : > { %v2087_v9 = vpack.c.bf16 %v1391_v5, %v1390_v4  ;;  %v231_v12 = vld [vmem:[%s2773_s26 + $0x28] sm:$0xff]  ;;  %v234_v15 = vld [vmem:[%s2773_s26 + $0x40] sm:$0xff]  ;;  %v237_v18 = vld [vmem:[%s2773_s26 + $0x58] sm:$0xff] }
  0x36   : > { %2012 = vmatpush1.bf16.msra.mxu0 %v2011_v34  ;;  %v235_v16 = vld [vmem:[%s2773_s26 + $0x48] sm:$0xff]  ;;  %v238_v19 = vld [vmem:[%s2773_s26 + $0x60] sm:$0xff]  ;;  %v240_v21 = vld [vmem:[%s2773_s26 + $0x70] sm:$0xff] }
  0x37   : > { %2044 = vmatpush1.bf16.msra.mxu1 %v2043_v37  ;;  %2046 = vmatprep.subr.bf16.mxu0 %v2045_v38  ;;  %v239_v20 = vld [vmem:[%s2773_s26 + $0x68] sm:$0xff]  ;;  %v241_v22 = vld [vmem:[%s2773_s26 + $0x78] sm:$0xff]  ;;  %v1376_v23 = vld [vmem:[%s3921_s3 + $0xb0] sm:$0xff]  ;;  %s1745_s26 = sshll.u32 %s3833_s6, 4  ;;  %s3872_s26 = int_to_ptr.vmem [resolvable:$true] %s1745_s26 }
  0x38   : > { %2078 = vmatprep.subr.bf16.mxu1 %v2077_v41  ;;  %v1377_v24 = vld [vmem:[%s3921_s3 + $0xb8] sm:$0xff]  ;;  %v1408_v25 = vld [vmem:[%s3921_s3 + $0x1b0] sm:$0xff]  ;;  %v1378_v34 = vld [vmem:[%s3921_s3 + $0xc0] sm:$0xff]  ;;  %s2407_s22 = scalar_lea.vmem %s3872_s26, 2048  ;;  %p2414_p0 = scmp.lt.s32.totalorder %s3872_s26, %s2412_s9 }
  0x39   : > { %393 = vmatmul.mubr.f32.vlgmr.msra.gmra.mrb[0].mxu0 %v226_v46  ;;  %v2057_v26 = vpack.c.bf16 %v1377_v24, %v1376_v23  ;;  %v1360_v27 = vld [vmem:[%s3921_s3 + $0x30] sm:$0xff]  ;;  %v1409_v28 = vld [vmem:[%s3921_s3 + $0x1b8] sm:$0xff]  ;;  %v1379_v35 = vld [vmem:[%s3921_s3 + $0xc8] sm:$0xff]  ;;  %p2408_p11 = scmp.ne.s32.totalorder %s3872_s26, %s2407_s22  ;;  %p2415_p1 = scmp.lt.s32.totalorder %s2413_s16, %s2407_s22 }
  0x3a   : > { %554 = vmatmul.mubr.f32.vlgmr.msra.gmra.mrb[0].mxu1 %v226_v46  ;;  %398 = vmatprep.mubr.f32.mxu0 %v2471_v7  ;;  %v2089_v30 = vpack.c.bf16 %v1409_v28, %v1408_v25  ;;  %v1392_v31 = vld [vmem:[%s3921_s3 + $0x130] sm:$0xff]  ;;  %v1393_v32 = vld [vmem:[%s3921_s3 + $0x138] sm:$0xff]  ;;  %v2061_v36 = vpack.c.bf16 %v1379_v35, %v1378_v34  ;;  %v1410_v37 = vld [vmem:[%s3921_s3 + $0x1c0] sm:$0xff] }
  0x3b   : > { %559 = vmatprep.mubr.f32.mxu1 %v2471_v7  ;;  %2048 = vmatpush3.bf16.msra.mxu0 %v2047_v49  ;;  %v2091_v33 = vpack.c.bf16 %v1393_v32, %v1392_v31  ;;  %v1411_v38 = vld [vmem:[%s3921_s3 + $0x1c8] sm:$0xff]  ;;  %v1362_v39 = vld [vmem:[%s3921_s3 + $0x40] sm:$0xff]  ;;  %v1380_v46 = vld [vmem:[%s3921_s3 + $0xd0] sm:$0xff]  ;;  %p2409_p12 = pnand %p2408_p11, %p2543_p5  ;;  %p2416_p2 = por %p2415_p1, %p2414_p0 }
  0x3c   : > { %2080 = vmatpush3.bf16.msra.mxu1 %v2079_v50  ;;  %2050 = vmatprep.subr.bf16.mxu0 %v2049_v51  ;;  %v1363_v40 = vld [vmem:[%s3921_s3 + $0x48] sm:$0xff]  ;;  %v2093_v41 = vpack.c.bf16 %v1411_v38, %v1410_v37  ;;  %v1394_v42 = vld [vmem:[%s3921_s3 + $0x140] sm:$0xff]  ;;  %v1381_v47 = vld [vmem:[%s3921_s3 + $0xd8] sm:$0xff] }
  0x3d   : > { %399 = vmatmul.mubr.f32.gmra.mrb[2].mxu0 %v227_v59  ;;  %2082 = vmatprep.subr.bf16.mxu1 %v2081_v55  ;;  %v2063_v43 = vpack.c.bf16 %v1363_v40, %v1362_v39  ;;  %v1395_v44 = vld [vmem:[%s3921_s3 + $0x148] sm:$0xff]  ;;  %v2065_v48 = vpack.c.bf16 %v1381_v47, %v1380_v46  ;;  %v1412_v49 = vld [vmem:[%s3921_s3 + $0x1d0] sm:$0xff]  ;;  %v1413_v50 = vld [vmem:[%s3921_s3 + $0x1d8] sm:$0xff]  ;;  %p2410_p13 = pneg %p2409_p12 }
  0x3e   : > { %560 = vmatmul.mubr.f32.gmra.mrb[2].mxu1 %v227_v59  ;;  %404 = vmatprep.mubr.f32.mxu0 %v2471_v7  ;;  %v2095_v45 = vpack.c.bf16 %v1395_v44, %v1394_v42  ;;  %v1364_v51 = vld [vmem:[%s3921_s3 + $0x50] sm:$0xff]  ;;  %v1365_v52 = vld [vmem:[%s3921_s3 + $0x58] sm:$0xff]  ;;  %v2097_v53 = vpack.c.bf16 %v1413_v50, %v1412_v49  ;;  %v1382_v58 = vld [vmem:[%s3921_s3 + $0xe0] sm:$0xff] }
  0x3f   : > { %565 = vmatprep.mubr.f32.mxu1 %v2471_v7  ;;  %2052 = vmatpush3.bf16.msra.mxu0 %v2051_v62  ;;  %v1396_v54 = vld [vmem:[%s3921_s3 + $0x150] sm:$0xff]  ;;  %v2067_v55 = vpack.c.bf16 %v1365_v52, %v1364_v51  ;;  %v1397_v56 = vld [vmem:[%s3921_s3 + $0x158] sm:$0xff]  ;;  %v1383_v59 = vld [vmem:[%s3921_s3 + $0xe8] sm:$0xff]  ;;  %p2417_p3 = pnand %p2416_p2, %p2410_p13 }
  0x40   : > { %2084 = vmatpush3.bf16.msra.mxu1 %v2083_v63  ;;  %2054 = vmatprep.subr.bf16.mxu0 %v2053_v0  ;;  %v2099_v57 = vpack.c.bf16 %v1397_v56, %v1396_v54  ;;  %v2069_v60 = vpack.c.bf16 %v1383_v59, %v1382_v58  ;;  %v1414_v61 = vld [vmem:[%s3921_s3 + $0x1e0] sm:$0xff]  ;;  %v1415_v62 = vld [vmem:[%s3921_s3 + $0x1e8] sm:$0xff] }
  0x41   : > { %405 = vmatmul.mubr.f32.gmra.mrb[4].mxu0 %v228_v6  ;;  %2086 = vmatprep.subr.bf16.mxu1 %v2085_v3  ;;  %v1366_v63 = vld [vmem:[%s3921_s3 + $0x60] sm:$0xff]  ;;  %v1367_v0 = vld [vmem:[%s3921_s3 + $0x68] sm:$0xff]  ;;  %v2101_v1 = vpack.c.bf16 %v1415_v62, %v1414_v61 }
  0x42   : > { %566 = vmatmul.mubr.f32.gmra.mrb[4].mxu1 %v228_v6  ;;  %410 = vmatprep.mubr.f32.mxu0 %v2471_v7  ;;  %v1398_v2 = vld [vmem:[%s3921_s3 + $0x160] sm:$0xff]  ;;  %v2071_v3 = vpack.c.bf16 %v1367_v0, %v1366_v63  ;;  %v1399_v4 = vld [vmem:[%s3921_s3 + $0x168] sm:$0xff]  ;;  %v1384_v6 = vld [vmem:[%s3921_s3 + $0xf0] sm:$0xff] }
  0x43   : > { %571 = vmatprep.mubr.f32.mxu1 %v2471_v7  ;;  %2056 = vmatpush3.bf16.msra.mxu0 %v2055_v8  ;;  %v2103_v5 = vpack.c.bf16 %v1399_v4, %v1398_v2  ;;  %v1385_v8 = vld [vmem:[%s3921_s3 + $0xf8] sm:$0xff] }
  0x44   : > { %2088 = vmatpush3.bf16.msra.mxu1 %v2087_v9  ;;  %2058 = vmatprep.subr.bf16.mxu0 %v2057_v26  ;;  %v2073_v9 = vpack.c.bf16 %v1385_v8, %v1384_v6 }
  0x45   : > { %411 = vmatmul.mubr.f32.gmra.mrb[6].mxu0 %v229_v10  ;;  %2090 = vmatprep.subr.bf16.mxu1 %v2089_v30 }
  0x46   : > { %572 = vmatmul.mubr.f32.gmra.mrb[6].mxu1 %v229_v10  ;;  %416 = vmatprep.mubr.f32.mxu0 %v2471_v7  ;;  %v1416_v10 = vld [vmem:[%s3921_s3 + $0x1f0] sm:$0xff] }
  0x47   : > { %577 = vmatprep.mubr.f32.mxu1 %v2471_v7 }
  0x48   : > { %2092 = vmatpush3.bf16.msra.mxu1 %v2091_v33 }
  0x49   : > { %417 = vmatmul.mubr.f32.gmra.mrb[8].mxu0 %v230_v11  ;;  %2094 = vmatprep.subr.bf16.mxu1 %v2093_v41 }
  0x4a   : > { %578 = vmatmul.mubr.f32.gmra.mrb[8].mxu1 %v230_v11  ;;  %422 = vmatprep.mubr.f32.mxu0 %v2471_v7  ;;  %v1417_v11 = vld [vmem:[%s3921_s3 + $0x1f8] sm:$0xff] }
  0x4b   : > { %583 = vmatprep.mubr.f32.mxu1 %v2471_v7 }
  0x4c   : > { %2096 = vmatpush3.bf16.msra.mxu1 %v2095_v45 }
  0x4d   : > { %423 = vmatmul.mubr.f32.gmra.mrb[10].mxu0 %v231_v12  ;;  %2098 = vmatprep.subr.bf16.mxu1 %v2097_v53 }
  0x4e   : > { %584 = vmatmul.mubr.f32.gmra.mrb[10].mxu1 %v231_v12  ;;  %428 = vmatprep.mubr.f32.mxu0 %v2471_v7  ;;  %v1368_v12 = vld [vmem:[%s3921_s3 + $0x70] sm:$0xff] }
  0x4f   : > { %589 = vmatprep.mubr.f32.mxu1 %v2471_v7 }
  0x50   : > { %2100 = vmatpush3.bf16.msra.mxu1 %v2099_v57 }
  0x51   : > { %429 = vmatmul.mubr.f32.gmra.mrb[12].mxu0 %v232_v13  ;;  %2102 = vmatprep.subr.bf16.mxu1 %v2101_v1 }
  0x52   : > { %590 = vmatmul.mubr.f32.gmra.mrb[12].mxu1 %v232_v13  ;;  %434 = vmatprep.mubr.f32.mxu0 %v2471_v7  ;;  %v1369_v13 = vld [vmem:[%s3921_s3 + $0x78] sm:$0xff] }
  0x53   : > { %595 = vmatprep.mubr.f32.mxu1 %v2471_v7 }
  0x54   : > { %2104 = vmatpush3.bf16.msra.mxu1 %v2103_v5 }
  0x55   : > { %435 = vmatmul.mubr.f32.gmra.mrb[14].mxu0 %v233_v14 }
  0x56   : > { %596 = vmatmul.mubr.f32.gmra.mrb[14].mxu1 %v233_v14  ;;  %440 = vmatprep.mubr.f32.mxu0 %v2471_v7  ;;  %v2105_v14 = vpack.c.bf16 %v1417_v11, %v1416_v10 }
  0x57   : > { %601 = vmatprep.mubr.f32.mxu1 %v2471_v7 }
  0x58   : > { %2106 = vmatprep.subr.bf16.mxu1 %v2105_v14 }
  0x59   : > { %441 = vmatmul.mubr.f32.gmra.mrb[16].mxu0 %v234_v15 }
  0x5a   : > { %602 = vmatmul.mubr.f32.gmra.mrb[16].mxu1 %v234_v15  ;;  %446 = vmatprep.mubr.f32.mxu0 %v2471_v7  ;;  %v1400_v15 = vld [vmem:[%s3921_s3 + $0x170] sm:$0xff] }
  0x5b   : > { %607 = vmatprep.mubr.f32.mxu1 %v2471_v7 }
  0x5d   : > { %447 = vmatmul.mubr.f32.gmra.mrb[18].mxu0 %v235_v16 }
  0x5e   : > { %608 = vmatmul.mubr.f32.gmra.mrb[18].mxu1 %v235_v16  ;;  %452 = vmatprep.mubr.f32.mxu0 %v2471_v7  ;;  %v2075_v16 = vpack.c.bf16 %v1369_v13, %v1368_v12 }
  0x5f   : > { %613 = vmatprep.mubr.f32.mxu1 %v2471_v7 }
  0x61   : > { %453 = vmatmul.mubr.f32.gmra.mrb[20].mxu0 %v236_v17 }
  0x62   : > { %614 = vmatmul.mubr.f32.gmra.mrb[20].mxu1 %v236_v17  ;;  %458 = vmatprep.mubr.f32.mxu0 %v2471_v7  ;;  %v1401_v17 = vld [vmem:[%s3921_s3 + $0x178] sm:$0xff] }
  0x63   : > { %619 = vmatprep.mubr.f32.mxu1 %v2471_v7 }
  0x65   : > { %459 = vmatmul.mubr.f32.gmra.mrb[22].mxu0 %v237_v18 }
  0x66   : > { %620 = vmatmul.mubr.f32.gmra.mrb[22].mxu1 %v237_v18  ;;  %464 = vmatprep.mubr.f32.mxu0 %v2471_v7  ;;  %v2107_v18 = vpack.c.bf16 %v1401_v17, %v1400_v15 }
  0x67   : > { %625 = vmatprep.mubr.f32.mxu1 %v2471_v7 }
  0x68   : > { %2108 = vmatpush3.bf16.msra.mxu1 %v2107_v18 }
  0x69   : > { %465 = vmatmul.mubr.f32.gmra.mrb[24].mxu0 %v238_v19 }
  0x6a   : > { %626 = vmatmul.mubr.f32.gmra.mrb[24].mxu1 %v238_v19  ;;  %470 = vmatprep.mubr.f32.mxu0 %v2471_v7  ;;  %v308_v19 = vlaneseq }
  0x6b   : > { %631 = vmatprep.mubr.f32.mxu1 %v2471_v7 }
  0x6d   : > { %471 = vmatmul.mubr.f32.gmra.mrb[26].mxu0 %v239_v20 }
  0x6e   : > { %632 = vmatmul.mubr.f32.gmra.mrb[26].mxu1 %v239_v20  ;;  %476 = vmatprep.mubr.f32.mxu0 %v2471_v7  ;;  %v309_v20 = vshrl.u32 %v308_v19, 7 }
  0x6f   : > { %637 = vmatprep.mubr.f32.mxu1 %v2471_v7 }
  0x70   : > { %v318_v23 = vsub.s32 2, %v309_v20  ;;  %v314_v24 = vsub.s32 1, %v309_v20  ;;  %v322_v25 = vsub.s32 3, %v309_v20 }
  0x71   : > { %477 = vmatmul.mubr.f32.gmra.mrb[28].mxu0 %v240_v21 }
  0x72   : > { %638 = vmatmul.mubr.f32.gmra.mrb[28].mxu1 %v240_v21  ;;  %482 = vmatprep.mubr.f32.mxu0 %v2471_v7  ;;  %v310_v21 = vsub.s32 0, %v309_v20 }
  0x73   : > { %643 = vmatprep.mubr.f32.mxu1 %v2471_v7  ;;  %v1361_v7 = vld [vmem:[%s3921_s3 + $0x38] sm:$0xff] }
  0x74   : > { %v2059_v29 = vpack.c.bf16 %v1361_v7, %v1360_v27 }
  0x75   : > { %483 = vmatmul.mubr.f32.gmra.mrb[30].mxu0 %v241_v22 }
  0x76   : > { %644 = vmatmul.mubr.f32.gmra.mrb[30].mxu1 %v241_v22  ;;  %2060 = vmatpush3.bf16.msra.mxu0 %v2059_v29  ;;  %v306_v22 = vld [vmem:[%s3920_s2] sm:$0xf] }
  0x77   : > { %2062 = vmatprep.subr.bf16.mxu0 %v2061_v36  ;;  %v3004_v26 = vrot.slane %v306_v22, %v310_v21  ;;  %v3006_v27 = vrot.slane %v306_v22, %v318_v23  ;;  %v3008_v7 = vrot.slane %v306_v22, %v314_v24  ;;  %v3010_v28 = vrot.slane %v306_v22, %v322_v25 }
  0x7a   : > { %2064 = vmatpush3.bf16.msra.mxu0 %v2063_v43 }
  0x7b   : > { %2066 = vmatprep.subr.bf16.mxu0 %v2065_v48 }
  0x7e   : > { %2068 = vmatpush3.bf16.msra.mxu0 %v2067_v55 }
  0x7f   : > { %2070 = vmatprep.subr.bf16.mxu0 %v2069_v60 }
  0x82   : > { %2072 = vmatpush3.bf16.msra.mxu0 %v2071_v3 }
  0x83   : > { %2074 = vmatprep.subr.bf16.mxu0 %v2073_v9 }
  0x86   : > { %2076 = vmatpush3.bf16.msra.mxu0 %v2075_v16 }
 0x10c   : > { %v394_v29 = vpop.f32.mrb[0].mxu0 }
 0x10d   : > { %v3013_v30 = vadd.f32 %v394_v29, %v3004_v26  ;;  %v555_v31 = vpop.f32.mrb[0].mxu1  ;;  %v396_v32 = vpop.f32.mrb[1].mxu0 }
 0x10e   : > { %v3016_v33 = vadd.f32 %v555_v31, %v3006_v27  ;;  %v3019_v34 = vadd.f32 %v396_v32, %v3008_v7  ;;  %v557_v35 = vpop.f32.mrb[1].mxu1 }
 0x10f   : > { %v650_v36 = vmul.f32 %v3013_v30, %v3013_v30  ;;  %v3024_v37 = vadd.f32 %v557_v35, %v3010_v28 }
 0x110   : > { %v652_v38 = vmul.f32 %v3016_v33, %v3016_v33  ;;  %v651_v39 = vmul.f32 %v3019_v34, %v3019_v34  ;;  %v400_v40 = vpop.f32.mrb[2].mxu0 }
 0x111   : > { %v714_v41 = vmul.f32 %v650_v36, %v3013_v30  ;;  %v653_v42 = vmul.f32 %v3024_v37, %v3024_v37  ;;  %v3034_v43 = vadd.f32 %v400_v40, %v3004_v26  ;;  %v561_v44 = vpop.f32.mrb[2].mxu1  ;;  %v402_v45 = vpop.f32.mrb[3].mxu0 }
 0x112   : > { %v716_v46 = vmul.f32 %v652_v38, %v3016_v33  ;;  %v715_v47 = vmul.f32 %v651_v39, %v3019_v34  ;;  %v3039_v48 = vadd.f32 %v561_v44, %v3006_v27  ;;  %v3042_v49 = vadd.f32 %v402_v45, %v3008_v7  ;;  %v563_v50 = vpop.f32.mrb[3].mxu1 }
 0x113   : > { %3974 = vst [vmem:[#allocation5_spill] sm:$0xff] %v3034_v43  ;;  %v778_v51 = vmul.f32 0.044715, %v714_v41  ;;  %v717_v52 = vmul.f32 %v653_v42, %v3024_v37  ;;  %v654_v53 = vmul.f32 %v3034_v43, %v3034_v43  ;;  %v3048_v54 = vadd.f32 %v563_v50, %v3010_v28 }
 0x114   : > { %3975 = vst [vmem:[#allocation6_spill] sm:$0xff] %v3039_v48  ;;  %3976 = vst [vmem:[#allocation7_spill] sm:$0xff] %v3042_v49  ;;  %v780_v55 = vmul.f32 0.044715, %v716_v46  ;;  %v779_v56 = vmul.f32 0.044715, %v715_v47  ;;  %v656_v57 = vmul.f32 %v3039_v48, %v3039_v48  ;;  %v655_v58 = vmul.f32 %v3042_v49, %v3042_v49 }
 0x115   : > { %3977 = vst [vmem:[#allocation8_spill] sm:$0xff] %v3048_v54  ;;  %v406_v59 = vpop.f32.mrb[4].mxu0  ;;  %v842_v60 = vadd.f32 %v778_v51, %v3013_v30  ;;  %v781_v61 = vmul.f32 0.044715, %v717_v52  ;;  %v718_v62 = vmul.f32 %v654_v53, %v3034_v43  ;;  %v657_v63 = vmul.f32 %v3048_v54, %v3048_v54  ;;  %v567_v0 = vpop.f32.mrb[4].mxu1 }
 0x116   : > { %v408_v1 = vpop.f32.mrb[5].mxu0  ;;  %v844_v2 = vadd.f32 %v780_v55, %v3016_v33  ;;  %v843_v3 = vadd.f32 %v779_v56, %v3019_v34  ;;  %v720_v4 = vmul.f32 %v656_v57, %v3039_v48  ;;  %v719_v5 = vmul.f32 %v655_v58, %v3042_v49  ;;  %v569_v6 = vpop.f32.mrb[5].mxu1 }
 0x117   : > { %v906_v8 = vmul.f32 1.5957692, %v842_v60  ;;  %v845_v9 = vadd.f32 %v781_v61, %v3024_v37  ;;  %v782_v10 = vmul.f32 0.044715, %v718_v62  ;;  %v721_v11 = vmul.f32 %v657_v63, %v3048_v54 }
 0x118   : > { %v908_v12 = vmul.f32 1.5957692, %v844_v2  ;;  %v907_v13 = vmul.f32 1.5957692, %v843_v3  ;;  %v784_v14 = vmul.f32 0.044715, %v720_v4  ;;  %v3065_v15 = vadd.f32 %v406_v59, %v3004_v26 }
 0x119   : > { %v970_v16 = vsub.f32 0.0, %v906_v8  ;;  %v909_v17 = vmul.f32 1.5957692, %v845_v9  ;;  %v846_v18 = vadd.f32 %v782_v10, %v3034_v43  ;;  %v783_v19 = vmul.f32 0.044715, %v719_v5  ;;  %v412_v20 = vpop.f32.mrb[6].mxu0 }
 0x11a   : > { %3978 = vst [vmem:[#allocation9_spill] sm:$0xff] %v3065_v15  ;;  %v972_v21 = vsub.f32 0.0, %v908_v12  ;;  %v971_v22 = vsub.f32 0.0, %v907_v13  ;;  %v848_v23 = vadd.f32 %v784_v14, %v3039_v48  ;;  %v785_v24 = vmul.f32 0.044715, %v721_v11  ;;  %v573_v25 = vpop.f32.mrb[6].mxu1 }
 0x11b   : > { %v414_v29 = vpop.f32.mrb[7].mxu0  ;;  %v1034_v31 = vmul.f32 1.442695, %v970_v16  ;;  %v973_v32 = vsub.f32 0.0, %v909_v17  ;;  %v910_v35 = vmul.f32 1.5957692, %v846_v18  ;;  %v847_v36 = vadd.f32 %v783_v19, %v3042_v49 }
 0x11c   : > { %v575_v38 = vpop.f32.mrb[7].mxu1  ;;  %v1038_v39 = vmul.f32 1.442695, %v972_v21  ;;  %v1036_v40 = vmul.f32 1.442695, %v971_v22  ;;  %v849_v42 = vadd.f32 %v785_v24, %v3048_v54  ;;  %v3071_v47 = vpop.f32.mrb[8].mxu0  ;;  %v658_v52 = vmul.f32 %v3065_v15, %v3065_v15 }
 0x11d   : > { %v912_v41 = vmul.f32 1.5957692, %v848_v23  ;;  %2151 = vpow2.f32 %v1034_v31  ;;  %v1040_v44 = vmul.f32 1.442695, %v973_v32  ;;  %v974_v45 = vsub.f32 0.0, %v910_v35  ;;  %v3075_v53 = vpop.f32.mrb[8].mxu1 }
 0x11e   : > { %v911_v46 = vmul.f32 1.5957692, %v847_v36  ;;  %2153 = vpow2.f32 %v1038_v39  ;;  %v913_v51 = vmul.f32 1.5957692, %v849_v42  ;;  %v3077_v55 = vpop.f32.mrb[9].mxu0  ;;  %v3080_v58 = vadd.f32 %v567_v0, %v3006_v27  ;;  %v3082_v59 = vpop.f32.mrb[9].mxu1 }
 0x11f   : > { %v976_v50 = vsub.f32 0.0, %v912_v41  ;;  %2155 = vpow2.f32 %v1036_v40  ;;  %v1042_v56 = vmul.f32 1.442695, %v974_v45  ;;  %v722_v62 = vmul.f32 %v658_v52, %v3065_v15 }
 0x120   : > { %v975_v57 = vsub.f32 0.0, %v911_v46  ;;  %3979 = vst [vmem:[#allocation10_spill] sm:$0xff] %v3080_v58  ;;  %2157 = vpow2.f32 %v1040_v44  ;;  %v977_v61 = vsub.f32 0.0, %v913_v51  ;;  %v3085_v63 = vpop.f32.mrb[10].mxu0  ;;  %v660_v3 = vmul.f32 %v3080_v58, %v3080_v58 }
 0x121   : > { %v1046_v60 = vmul.f32 1.442695, %v976_v50  ;;  %2159 = vpow2.f32 %v1042_v56  ;;  %v3090_v4 = vadd.f32 %v408_v1, %v3008_v7  ;;  %v3092_v5 = vpop.f32.mrb[10].mxu1  ;;  %v3094_v0 = vpop.f32.mrb[11].mxu0  ;;  %v786_v9 = vmul.f32 0.044715, %v722_v62 }
 0x122   : > { %v1044_v2 = vmul.f32 1.442695, %v975_v57  ;;  %v1048_v8 = vmul.f32 1.442695, %v977_v61  ;;  %v3097_v10 = vadd.f32 %v569_v6, %v3010_v28  ;;  %v3099_v11 = vpop.f32.mrb[11].mxu1  ;;  %v724_v12 = vmul.f32 %v660_v3, %v3080_v58 }
 0x123   : > { %3980 = vst [vmem:[#allocation11_spill] sm:$0xff] %v3090_v4  ;;  %2161 = vpow2.f32 %v1046_v60  ;;  %v659_v13 = vmul.f32 %v3090_v4, %v3090_v4  ;;  %v3105_v1 = vadd.f32 %v412_v20, %v3004_v26  ;;  %v850_v14 = vadd.f32 %v786_v9, %v3065_v15 }
 0x124   : > { %3981 = vst [vmem:[#allocation12_spill] sm:$0xff] %v3097_v10  ;;  %2163 = vpow2.f32 %v1044_v2  ;;  %v661_v16 = vmul.f32 %v3097_v10, %v3097_v10  ;;  %v3111_v17 = vadd.f32 %v573_v25, %v3006_v27  ;;  %v3113_v6 = vpop.f32.mrb[12].mxu0  ;;  %v788_v18 = vmul.f32 0.044715, %v724_v12 }
 0x125   : > { %3982 = vst [vmem:[#allocation13_spill] sm:$0xff] %v3105_v1  ;;  %v723_v19 = vmul.f32 %v659_v13, %v3090_v4  ;;  %v662_v21 = vmul.f32 %v3105_v1, %v3105_v1  ;;  %v3119_v22 = vadd.f32 %v414_v29, %v3008_v7  ;;  %v3121_v20 = vpop.f32.mrb[12].mxu1  ;;  %v3123_v23 = vpop.f32.mrb[13].mxu0  ;;  %2165 = vpow2.f32 %v1048_v8 }
 0x126   : > { %3983 = vst [vmem:[#allocation14_spill] sm:$0xff] %v3111_v17  ;;  %v914_v24 = vmul.f32 1.5957692, %v850_v14  ;;  %v725_v25 = vmul.f32 %v661_v16, %v3097_v10  ;;  %v664_v31 = vmul.f32 %v3111_v17, %v3111_v17  ;;  %v3128_v32 = vpop.f32.mrb[13].mxu1  ;;  %v852_v36 = vadd.f32 %v788_v18, %v3080_v58 }
 0x127   : > { %3984 = vst [vmem:[#allocation15_spill] sm:$0xff] %v3119_v22  ;;  %v2152_v35 = vpop.eup %2151  ;;  %v787_v39 = vmul.f32 0.044715, %v723_v19  ;;  %v726_v29 = vmul.f32 %v662_v21, %v3105_v1  ;;  %v3133_v40 = vadd.f32 %v575_v38, %v3010_v28  ;;  %v663_v46 = vmul.f32 %v3119_v22, %v3119_v22 }
 0x128   : > { %v2154_v41 = vpop.eup %2153  ;;  %v1162_v42 = vadd.f32 1.0, %v2152_v35  ;;  %v978_v44 = vsub.f32 0.0, %v914_v24  ;;  %v789_v45 = vmul.f32 0.044715, %v725_v25  ;;  %v3137_v50 = vpop.f32.mrb[14].mxu0  ;;  %v728_v3 = vmul.f32 %v664_v31, %v3111_v17 }
 0x129   : > { %3985 = vst [vmem:[#allocation16_spill] sm:$0xff] %v3133_v40  ;;  %v2156_v51 = vpop.eup %2155  ;;  %v1164_v52 = vadd.f32 1.0, %v2154_v41  ;;  %v916_v56 = vmul.f32 1.5957692, %v852_v36  ;;  %v851_v57 = vadd.f32 %v787_v39, %v3090_v4  ;;  %v790_v60 = vmul.f32 0.044715, %v726_v29 }
 0x12a   : > { %v3140_v61 = vpop.f32.mrb[14].mxu1  ;;  %v2158_v62 = vpop.eup %2157  ;;  %2167 = vrcp.f32 %v1162_v42  ;;  %v1163_v38 = vadd.f32 1.0, %v2156_v51  ;;  %v853_v2 = vadd.f32 %v789_v45, %v3097_v10  ;;  %v1050_v36 = vmul.f32 1.442695, %v978_v44 }
 0x12b   : > { %v3144_v8 = vpop.f32.mrb[15].mxu0  ;;  %v3146_v9 = vpop.f32.mrb[15].mxu1  ;;  %2169 = vrcp.f32 %v1164_v52  ;;  %v1165_v13 = vadd.f32 1.0, %v2158_v62  ;;  %v980_v14 = vsub.f32 0.0, %v916_v56  ;;  %v915_v16 = vmul.f32 1.5957692, %v851_v57 }
 0x12c   : > { %v2160_v12 = vpop.eup %2159  ;;  %2171 = vrcp.f32 %v1163_v38  ;;  %v917_v21 = vmul.f32 1.5957692, %v853_v2  ;;  %v854_v24 = vadd.f32 %v790_v60, %v3105_v1  ;;  %v3149_v25 = vpop.f32.mrb[16].mxu0  ;;  %v792_v57 = vmul.f32 0.044715, %v728_v3 }
 0x12d   : > { %v2162_v18 = vpop.eup %2161  ;;  %v1166_v19 = vadd.f32 1.0, %v2160_v12  ;;  %2173 = vrcp.f32 %v1165_v13  ;;  %v979_v39 = vsub.f32 0.0, %v915_v16  ;;  %v3151_v29 = vpop.f32.mrb[16].mxu1  ;;  %v1054_v56 = vmul.f32 1.442695, %v980_v14 }
 0x12e   : > { %v2164_v35 = vpop.eup %2163  ;;  %v1168_v31 = vadd.f32 1.0, %v2162_v18  ;;  %v3153_v41 = vpop.f32.mrb[17].mxu0  ;;  %v981_v45 = vsub.f32 0.0, %v917_v21  ;;  %v918_v51 = vmul.f32 1.5957692, %v854_v24  ;;  %v727_v44 = vmul.f32 %v663_v46, %v3119_v22 }
 0x12f   : > { %2175 = vrcp.f32 %v1166_v19  ;;  %v1167_v42 = vadd.f32 1.0, %v2164_v35  ;;  %v3155_v52 = vpop.f32.mrb[17].mxu1  ;;  %v2166_v60 = vpop.eup %2165  ;;  %v1052_v62 = vmul.f32 1.442695, %v979_v39  ;;  %v856_v13 = vadd.f32 %v792_v57, %v3111_v17 }
 0x130   : > { %2177 = vrcp.f32 %v1168_v31  ;;  %v982_v38 = vsub.f32 0.0, %v918_v51  ;;  %v3158_v2 = vpop.f32.mrb[18].mxu0  ;;  %v1056_v12 = vmul.f32 1.442695, %v981_v45  ;;  %v665_v16 = vmul.f32 %v3133_v40, %v3133_v40 }
 0x131   : > { %2179 = vrcp.f32 %v1167_v42  ;;  %v3165_v18 = vadd.f32 %v3071_v47, %v3004_v26  ;;  %v3167_v14 = vpop.f32.mrb[18].mxu1  ;;  %v3169_v3 = vpop.f32.mrb[19].mxu0  ;;  %v791_v21 = vmul.f32 0.044715, %v727_v44  ;;  %v3173_v46 = vadd.f32 %v3075_v53, %v3006_v27 }
 0x132   : > { %2181 = vpow2.f32 %v1050_v36  ;;  %v1058_v19 = vmul.f32 1.442695, %v982_v38  ;;  %v3175_v24 = vpop.f32.mrb[19].mxu1  ;;  %v920_v35 = vmul.f32 1.5957692, %v856_v13  ;;  %v729_v31 = vmul.f32 %v665_v16, %v3133_v40 }
 0x133   : > { %3986 = vst [vmem:[#allocation17_spill] sm:$0xff] %v3165_v18  ;;  %3987 = vst [vmem:[#allocation18_spill] sm:$0xff] %v3173_v46  ;;  %2183 = vpow2.f32 %v1054_v56  ;;  %v666_v47 = vmul.f32 %v3165_v18, %v3165_v18  ;;  %v855_v36 = vadd.f32 %v791_v21, %v3119_v22  ;;  %v668_v42 = vmul.f32 %v3173_v46, %v3173_v46 }
 0x134   : > { %v3180_v39 = vpop.eup %2167  ;;  %2185 = vpow2.f32 %v1052_v62  ;;  %v3187_v53 = vadd.f32 %v3077_v55, %v3008_v7  ;;  %v3189_v45 = vpop.f32.mrb[20].mxu0  ;;  %v984_v56 = vsub.f32 0.0, %v920_v35  ;;  %v793_v57 = vmul.f32 0.044715, %v729_v31 }
 0x135   : > { %v3191_v51 = vpop.eup %2169  ;;  %2187 = vpow2.f32 %v1056_v12  ;;  %v3193_v38 = vpop.f32.mrb[20].mxu1  ;;  %v1169_v13 = vadd.f32 1.0, %v2166_v60  ;;  %v919_v16 = vmul.f32 1.5957692, %v855_v36  ;;  %v730_v21 = vmul.f32 %v666_v47, %v3165_v18 }
 0x136   : > { %3988 = vst [vmem:[#allocation19_spill] sm:$0xff] %v3187_v53  ;;  %v3195_v44 = vpop.f32.mrb[21].mxu0  ;;  %v3197_v62 = vpop.eup %2171  ;;  %2189 = vpow2.f32 %v1058_v19  ;;  %v1062_v1 = vmul.f32 1.442695, %v984_v56  ;;  %v857_v12 = vadd.f32 %v793_v57, %v3133_v40  ;;  %v732_v35 = vmul.f32 %v668_v42, %v3173_v46 }
 0x137   : > { %v3200_v55 = vpop.f32.mrb[21].mxu1  ;;  %v3202_v17 = vpop.eup %2173  ;;  %v667_v31 = vmul.f32 %v3187_v53, %v3187_v53  ;;  %v983_v58 = vsub.f32 0.0, %v919_v16  ;;  %v794_v60 = vmul.f32 0.044715, %v730_v21  ;;  %v3212_v19 = vadd.f32 %v3082_v59, %v3010_v28 }
 0x138   : > { %v3216_v47 = vadd.f32 %v3085_v63, %v3004_v26  ;;  %v3218_v36 = vpop.f32.mrb[22].mxu0  ;;  %2191 = vpow2.f32 %v1062_v1  ;;  %v921_v42 = vmul.f32 1.5957692, %v857_v12  ;;  %v796_v57 = vmul.f32 0.044715, %v732_v35 }
 0x139   : > { %v3208_v22 = vpop.eup %2175  ;;  %3990 = vst [vmem:[#allocation21_spill] sm:$0xff] %v3212_v19  ;;  %v731_v40 = vmul.f32 %v667_v31, %v3187_v53  ;;  %v3223_v15 = vpop.f32.mrb[22].mxu1  ;;  %v1060_v59 = vmul.f32 1.442695, %v983_v58  ;;  %v858_v10 = vadd.f32 %v794_v60, %v3165_v18  ;;  %v669_v63 = vmul.f32 %v3212_v19, %v3212_v19 }
 0x13a   : > { %3989 = vst [vmem:[#allocation20_spill] sm:$0xff] %v3208_v22  ;;  %3991 = vst [vmem:[#allocation22_spill] sm:$0xff] %v3216_v47  ;;  %v3220_v56 = vpop.eup %2177  ;;  %v3225_v16 = vpop.f32.mrb[23].mxu0  ;;  %v670_v4 = vmul.f32 %v3216_v47, %v3216_v47  ;;  %2193 = vrcp.f32 %v1169_v13  ;;  %v985_v12 = vsub.f32 0.0, %v921_v42  ;;  %v860_v35 = vadd.f32 %v796_v57, %v3173_v46 }
 0x13b   : > { %3992 = vst [vmem:[#allocation23_spill] sm:$0xff] %v3220_v56  ;;  %3993 = vst [vmem:[#allocation24_spill] sm:$0xff] %v3225_v16  ;;  %v3227_v21 = vpop.eup %2179  ;;  %v3234_v1 = vpop.f32.mrb[23].mxu1  ;;  %v795_v31 = vmul.f32 0.044715, %v731_v40  ;;  %v733_v22 = vmul.f32 %v669_v63, %v3212_v19  ;;  %v3241_v60 = vadd.f32 %v3092_v5, %v3006_v27  ;;  %2195 = vpow2.f32 %v1060_v59 }
 0x13c   : > { %3994 = vst [vmem:[#allocation25_spill] sm:$0xff] %v3227_v21  ;;  %3995 = vst [vmem:[#allocation26_spill] sm:$0xff] %v3234_v1  ;;  %v2182_v56 = vpop.eup %2181  ;;  %v922_v48 = vmul.f32 1.5957692, %v858_v10  ;;  %v734_v58 = vmul.f32 %v670_v4, %v3216_v47  ;;  %v3243_v18 = vpop.f32.mrb[24].mxu0 }
 0x13d   : > { %3996 = vst [vmem:[#allocation27_spill] sm:$0xff] %v3241_v60  ;;  %3997 = vst [vmem:[#allocation28_spill] sm:$0xff] %v3243_v18  ;;  %v2184_v43 = vpop.eup %2183  ;;  %v1170_v54 = vadd.f32 1.0, %v2182_v56  ;;  %v924_v13 = vmul.f32 1.5957692, %v860_v35  ;;  %v859_v42 = vadd.f32 %v795_v31, %v3187_v53  ;;  %v3246_v57 = vpop.f32.mrb[24].mxu1 }
 0x13e   : > { %v2186_v40 = vpop.eup %2185  ;;  %v1172_v10 = vadd.f32 1.0, %v2184_v43  ;;  %v986_v46 = vsub.f32 0.0, %v922_v48  ;;  %v797_v63 = vmul.f32 0.044715, %v733_v22  ;;  %v798_v21 = vmul.f32 0.044715, %v734_v58 }
 0x13f   : > { %v2188_v4 = vpop.eup %2187  ;;  %2197 = vrcp.f32 %v1170_v54  ;;  %v1171_v49 = vadd.f32 1.0, %v2186_v40  ;;  %v988_v5 = vsub.f32 0.0, %v924_v13  ;;  %v923_v1 = vmul.f32 1.5957692, %v859_v42  ;;  %v3248_v16 = vpop.f32.mrb[25].mxu0 }
 0x140   : > { %v3250_v18 = vpop.f32.mrb[25].mxu1  ;;  %v2190_v56 = vpop.eup %2189  ;;  %2199 = vrcp.f32 %v1172_v10  ;;  %v1173_v59 = vadd.f32 1.0, %v2188_v4  ;;  %v1064_v35 = vmul.f32 1.442695, %v985_v12  ;;  %v861_v31 = vadd.f32 %v797_v63, %v3212_v19 }
 0x141   : > { %v3253_v53 = vpop.f32.mrb[26].mxu0  ;;  %2201 = vrcp.f32 %v1171_v49  ;;  %v1174_v43 = vadd.f32 1.0, %v2190_v56  ;;  %v1066_v48 = vmul.f32 1.442695, %v986_v46  ;;  %v987_v22 = vsub.f32 0.0, %v923_v1  ;;  %v3255_v54 = vpop.f32.mrb[26].mxu1 }
 0x142   : > { %3998 = vst [vmem:[#allocation29_spill] sm:$0xff] %v3255_v54  ;;  %v3257_v58 = vpop.f32.mrb[27].mxu0  ;;  %2203 = vrcp.f32 %v1173_v59  ;;  %v925_v13 = vmul.f32 1.5957692, %v861_v31  ;;  %v862_v42 = vadd.f32 %v798_v21, %v3216_v47  ;;  %v672_v40 = vmul.f32 %v3241_v60, %v3241_v60  ;;  %v3262_v12 = vpop.f32.mrb[27].mxu1 }
 0x143   : > { %3999 = vst [vmem:[#allocation30_spill] sm:$0xff] %v3257_v58  ;;  %4000 = vst [vmem:[#allocation31_spill] sm:$0xff] %v3262_v12  ;;  %v2192_v10 = vpop.eup %2191  ;;  %2205 = vrcp.f32 %v1174_v43  ;;  %v1070_v63 = vmul.f32 1.442695, %v988_v5  ;;  %v3266_v49 = vadd.f32 %v3094_v0, %v3008_v7  ;;  %v3270_v46 = vadd.f32 %v3099_v11, %v3010_v28 }
 0x144   : > { %v1176_v1 = vadd.f32 1.0, %v2192_v10  ;;  %2207 = vpow2.f32 %v1064_v35  ;;  %v1068_v4 = vmul.f32 1.442695, %v987_v22  ;;  %v926_v21 = vmul.f32 1.5957692, %v862_v42  ;;  %v3272_v56 = vpop.f32.mrb[28].mxu0  ;;  %v3274_v59 = vpop.eup %2193 }
 0x145   : > { %4001 = vst [vmem:[#allocation32_spill] sm:$0xff] %v3266_v49  ;;  %4002 = vst [vmem:[#allocation33_spill] sm:$0xff] %v3270_v46  ;;  %2209 = vpow2.f32 %v1066_v48  ;;  %v736_v31 = vmul.f32 %v672_v40, %v3241_v60  ;;  %v671_v5 = vmul.f32 %v3266_v49, %v3266_v49  ;;  %v673_v0 = vmul.f32 %v3270_v46, %v3270_v46  ;;  %v3281_v43 = vpop.f32.mrb[28].mxu1  ;;  %v3283_v11 = vpop.f32.mrb[29].mxu0 }
 0x146   : > { %4003 = vst [vmem:[#allocation34_spill] sm:$0xff] %v3272_v56  ;;  %4004 = vst [vmem:[#allocation35_spill] sm:$0xff] %v3281_v43  ;;  %2211 = vrcp.f32 %v1176_v1  ;;  %v989_v35 = vsub.f32 0.0, %v925_v13  ;;  %v3287_v22 = vadd.f32 %v3113_v6, %v3004_v26  ;;  %v3289_v42 = vpop.f32.mrb[29].mxu1  ;;  %v2196_v48 = vpop.eup %2195  ;;  %v990_v1 = vsub.f32 0.0, %v926_v21 }
 0x147   : > { %4005 = vst [vmem:[#allocation36_spill] sm:$0xff] %v3283_v11  ;;  %4007 = vst [vmem:[#allocation38_spill] sm:$0xff] %v3289_v42  ;;  %2213 = vpow2.f32 %v1070_v63  ;;  %v800_v40 = vmul.f32 0.044715, %v736_v31  ;;  %v735_v10 = vmul.f32 %v671_v5, %v3266_v49  ;;  %v737_v47 = vmul.f32 %v673_v0, %v3270_v46 }
 0x148   : > { %4006 = vst [vmem:[#allocation37_spill] sm:$0xff] %v3287_v22  ;;  %2215 = vpow2.f32 %v1068_v4  ;;  %v674_v19 = vmul.f32 %v3287_v22, %v3287_v22  ;;  %v3295_v11 = vpop.f32.mrb[30].mxu0  ;;  %v3302_v63 = vadd.f32 %v3121_v20, %v3006_v27  ;;  %v1072_v0 = vmul.f32 1.442695, %v989_v35 }
 0x149   : > { %4008 = vst [vmem:[#allocation39_spill] sm:$0xff] %v3295_v11  ;;  %v3297_v13 = vpop.eup %2197  ;;  %v864_v6 = vadd.f32 %v800_v40, %v3241_v60  ;;  %v799_v43 = vmul.f32 0.044715, %v735_v10  ;;  %v3304_v31 = vpop.f32.mrb[30].mxu1  ;;  %v801_v42 = vmul.f32 0.044715, %v737_v47  ;;  %v3313_v21 = vadd.f32 %v3123_v23, %v3008_v7 }
 0x14a   : > { %4009 = vst [vmem:[#allocation40_spill] sm:$0xff] %v3297_v13  ;;  %4010 = vst [vmem:[#allocation41_spill] sm:$0xff] %v3302_v63  ;;  %v3306_v4 = vpop.f32.mrb[31].mxu0  ;;  %v3308_v5 = vpop.eup %2199  ;;  %v738_v11 = vmul.f32 %v674_v19, %v3287_v22  ;;  %v1175_v20 = vadd.f32 1.0, %v2196_v48  ;;  %v3329_v35 = vadd.f32 %v3128_v32, %v3010_v28  ;;  %v1074_v48 = vmul.f32 1.442695, %v990_v1 }
 0x14b   : > { %4011 = vst [vmem:[#allocation42_spill] sm:$0xff] %v3304_v31  ;;  %4012 = vst [vmem:[#allocation43_spill] sm:$0xff] %v3306_v4  ;;  %v3315_v40 = vpop.f32.mrb[31].mxu1  ;;  %v3317_v10 = vpop.eup %2201  ;;  %v928_v60 = vmul.f32 1.5957692, %v864_v6  ;;  %v863_v31 = vadd.f32 %v799_v43, %v3266_v49  ;;  %v676_v4 = vmul.f32 %v3302_v63, %v3302_v63  ;;  %v865_v47 = vadd.f32 %v801_v42, %v3270_v46 }
 0x14c   : > { %4013 = vst [vmem:[#allocation44_spill] sm:$0xff] %v3308_v5  ;;  %4014 = vst [vmem:[#allocation45_spill] sm:$0xff] %v3315_v40  ;;  %v3322_v56 = vpop.eup %2203  ;;  %v802_v19 = vmul.f32 0.044715, %v738_v11  ;;  %v675_v23 = vmul.f32 %v3313_v21, %v3313_v21  ;;  %v677_v42 = vmul.f32 %v3329_v35, %v3329_v35  ;;  %2217 = vrcp.f32 %v1175_v20 }
 0x14d   : > { %4015 = vst [vmem:[#allocation46_spill] sm:$0xff] %v3317_v10  ;;  %4016 = vst [vmem:[#allocation47_spill] sm:$0xff] %v3322_v56  ;;  %v3331_v40 = vpop.eup %2205  ;;  %v992_v6 = vsub.f32 0.0, %v928_v60  ;;  %v927_v43 = vmul.f32 1.5957692, %v863_v31  ;;  %v740_v49 = vmul.f32 %v676_v4, %v3302_v63  ;;  %2219 = vpow2.f32 %v1072_v0 }
 0x14e   : > { %4017 = vst [vmem:[#allocation48_spill] sm:$0xff] %v3331_v40  ;;  %v2208_v5 = vpop.eup %2207  ;;  %v929_v13 = vmul.f32 1.5957692, %v865_v47  ;;  %v866_v12 = vadd.f32 %v802_v19, %v3287_v22  ;;  %v739_v11 = vmul.f32 %v675_v23, %v3313_v21  ;;  %v3340_v40 = vadd.f32 %v3137_v50, %v3004_v26 }
 0x14f   : > { %v2210_v46 = vpop.eup %2209  ;;  %v804_v32 = vmul.f32 0.044715, %v740_v49  ;;  %v1177_v1 = vadd.f32 1.0, %v2208_v5  ;;  %v991_v31 = vsub.f32 0.0, %v927_v43  ;;  %v741_v22 = vmul.f32 %v677_v42, %v3329_v35 }
 0x150   : > { %4018 = vst [vmem:[#allocation49_spill] sm:$0xff] %v3340_v40  ;;  %v3342_v60 = vpop.eup %2211  ;;  %v930_v4 = vmul.f32 1.5957692, %v866_v12  ;;  %v803_v47 = vmul.f32 0.044715, %v739_v11  ;;  %v1178_v19 = vadd.f32 1.0, %v2210_v46  ;;  %2221 = vpow2.f32 %v1074_v48 }
 0x151   : > { %4019 = vst [vmem:[#allocation50_spill] sm:$0xff] %v3342_v60  ;;  %v2214_v58 = vpop.eup %2213  ;;  %v868_v23 = vadd.f32 %v804_v32, %v3302_v63  ;;  %v1078_v49 = vmul.f32 1.442695, %v992_v6  ;;  %v993_v20 = vsub.f32 0.0, %v929_v13  ;;  %2223 = vrcp.f32 %v1177_v1 }
 0x152   : > { %v2216_v54 = vpop.eup %2215  ;;  %v1180_v56 = vadd.f32 1.0, %v2214_v58  ;;  %v994_v50 = vsub.f32 0.0, %v930_v4  ;;  %v867_v60 = vadd.f32 %v803_v47, %v3313_v21  ;;  %v1076_v5 = vmul.f32 1.442695, %v991_v31 }
 0x153   : > { %v932_v10 = vmul.f32 1.5957692, %v868_v23  ;;  %v805_v12 = vmul.f32 0.044715, %v741_v22  ;;  %v678_v46 = vmul.f32 %v3340_v40, %v3340_v40  ;;  %2225 = vrcp.f32 %v1178_v19 }
 0x154   : > { %v1179_v0 = vadd.f32 1.0, %v2216_v54  ;;  %v931_v43 = vmul.f32 1.5957692, %v867_v60  ;;  %2227 = vpow2.f32 %v1078_v49  ;;  %v1080_v58 = vmul.f32 1.442695, %v993_v20 }
 0x155   : > { %v996_v11 = vsub.f32 0.0, %v932_v10  ;;  %v869_v48 = vadd.f32 %v805_v12, %v3329_v35  ;;  %v742_v13 = vmul.f32 %v678_v46, %v3340_v40  ;;  %2229 = vrcp.f32 %v1180_v56 }
 0x156   : > { %v1082_v6 = vmul.f32 1.442695, %v994_v50  ;;  %v3353_v42 = vadd.f32 %v3140_v61, %v3006_v27  ;;  %2231 = vpow2.f32 %v1076_v5  ;;  %v995_v22 = vsub.f32 0.0, %v931_v43  ;;  %v3359_v60 = vpop.eup %2217 }
 0x157   : > { %v806_v32 = vmul.f32 0.044715, %v742_v13  ;;  %v3357_v54 = vadd.f32 %v3144_v8, %v3008_v7  ;;  %2233 = vrcp.f32 %v1179_v0  ;;  %v3365_v56 = vadd.f32 %v3146_v9, %v3010_v28  ;;  %v2220_v47 = vpop.eup %2219 }
 0x158   : > { %4020 = vst [vmem:[#allocation51_spill] sm:$0xff] %v3353_v42  ;;  %v680_v10 = vmul.f32 %v3353_v42, %v3353_v42  ;;  %v1086_v1 = vmul.f32 1.442695, %v996_v11  ;;  %v933_v61 = vmul.f32 1.5957692, %v869_v48  ;;  %2235 = vpow2.f32 %v1080_v58 }
 0x159   : > { %4021 = vst [vmem:[#allocation52_spill] sm:$0xff] %v3357_v54  ;;  %4022 = vst [vmem:[#allocation53_spill] sm:$0xff] %v3365_v56  ;;  %v870_v31 = vadd.f32 %v806_v32, %v3340_v40  ;;  %v679_v4 = vmul.f32 %v3357_v54, %v3357_v54  ;;  %v681_v19 = vmul.f32 %v3365_v56, %v3365_v56  ;;  %2237 = vpow2.f32 %v1082_v6 }
 0x15a   : > { %v744_v8 = vmul.f32 %v680_v10, %v3353_v42  ;;  %v3375_v23 = vadd.f32 %v3149_v25, %v3004_v26  ;;  %v2222_v9 = vpop.eup %2221  ;;  %v1084_v49 = vmul.f32 1.442695, %v995_v22  ;;  %v3383_v0 = vadd.f32 %v3151_v29, %v3006_v27 }
 0x15b   : > { %v934_v20 = vmul.f32 1.5957692, %v870_v31  ;;  %v743_v50 = vmul.f32 %v679_v4, %v3357_v54  ;;  %v745_v12 = vmul.f32 %v681_v19, %v3365_v56  ;;  %v3385_v43 = vpop.eup %2223  ;;  %v1181_v25 = vadd.f32 1.0, %v2220_v47 }
 0x15c   : > { %4023 = vst [vmem:[#allocation54_spill] sm:$0xff] %v3375_v23  ;;  %v808_v5 = vmul.f32 0.044715, %v744_v8  ;;  %v682_v46 = vmul.f32 %v3375_v23, %v3375_v23  ;;  %4024 = vst [vmem:[#allocation55_spill] sm:$0xff] %v3383_v0  ;;  %2239 = vpow2.f32 %v1086_v1  ;;  %v997_v11 = vsub.f32 0.0, %v933_v61 }
 0x15d   : > { %v807_v48 = vmul.f32 0.044715, %v743_v50  ;;  %v3387_v13 = vpop.eup %2225  ;;  %v809_v6 = vmul.f32 0.044715, %v745_v12  ;;  %v684_v32 = vmul.f32 %v3383_v0, %v3383_v0  ;;  %v1182_v31 = vadd.f32 1.0, %v2222_v9 }
 0x15e   : > { %v872_v58 = vadd.f32 %v808_v5, %v3353_v42  ;;  %v746_v22 = vmul.f32 %v682_v46, %v3375_v23  ;;  %v2228_v10 = vpop.eup %2227  ;;  %v998_v29 = vsub.f32 0.0, %v934_v20  ;;  %v3396_v1 = vadd.f32 %v3153_v41, %v3008_v7 }
 0x15f   : > { %v871_v4 = vadd.f32 %v807_v48, %v3357_v54  ;;  %v3398_v61 = vpop.eup %2229  ;;  %2241 = vpow2.f32 %v1084_v49  ;;  %v873_v8 = vadd.f32 %v809_v6, %v3365_v56  ;;  %v1088_v5 = vmul.f32 1.442695, %v997_v11 }
 0x160   : > { %v936_v47 = vmul.f32 1.5957692, %v872_v58  ;;  %v810_v19 = vmul.f32 0.044715, %v746_v22  ;;  %v2232_v50 = vpop.eup %2231  ;;  %v748_v46 = vmul.f32 %v684_v32, %v3383_v0  ;;  %v683_v9 = vmul.f32 %v3396_v1, %v3396_v1 }
 0x161   : > { %v935_v12 = vmul.f32 1.5957692, %v871_v4  ;;  %v3404_v20 = vpop.eup %2233  ;;  %v1184_v48 = vadd.f32 1.0, %v2228_v10  ;;  %v937_v42 = vmul.f32 1.5957692, %v873_v8  ;;  %2243 = vrcp.f32 %v1181_v25 }
 0x162   : > { %v1000_v41 = vsub.f32 0.0, %v936_v47  ;;  %v874_v40 = vadd.f32 %v810_v19, %v3375_v23  ;;  %v1090_v49 = vmul.f32 1.442695, %v998_v29  ;;  %v812_v58 = vmul.f32 0.044715, %v748_v46  ;;  %v2236_v22 = vpop.eup %2235 }
 0x163   : > { %v747_v6 = vmul.f32 %v683_v9, %v3396_v1  ;;  %2245 = vrcp.f32 %v1182_v31  ;;  %v1183_v11 = vadd.f32 1.0, %v2232_v50  ;;  %v999_v4 = vsub.f32 0.0, %v935_v12  ;;  %v2238_v56 = vpop.eup %2237 }
 0x164   : > { %v938_v32 = vmul.f32 1.5957692, %v874_v40  ;;  %2247 = vpow2.f32 %v1088_v5  ;;  %v1001_v63 = vsub.f32 0.0, %v937_v42  ;;  %v876_v54 = vadd.f32 %v812_v58, %v3383_v0 }
 0x165   : > { %2249 = vrcp.f32 %v1184_v48  ;;  %v1094_v10 = vmul.f32 1.442695, %v1000_v41  ;;  %v1185_v19 = vadd.f32 1.0, %v2236_v22  ;;  %v811_v25 = vmul.f32 0.044715, %v747_v6 }
 0x166   : > { %v1002_v47 = vsub.f32 0.0, %v938_v32  ;;  %v2240_v8 = vpop.eup %2239  ;;  %2251 = vpow2.f32 %v1090_v49  ;;  %v3411_v29 = vadd.f32 %v3155_v52, %v3010_v28  ;;  %v1092_v31 = vmul.f32 1.442695, %v999_v4 }
 0x167   : > { %2253 = vrcp.f32 %v1183_v11  ;;  %v940_v50 = vmul.f32 1.5957692, %v876_v54  ;;  %v3415_v40 = vadd.f32 %v3158_v2, %v3004_v26  ;;  %v1096_v42 = vmul.f32 1.442695, %v1001_v63 }
 0x168   : > { %v1098_v5 = vmul.f32 1.442695, %v1002_v47  ;;  %v875_v12 = vadd.f32 %v811_v25, %v3396_v1  ;;  %v685_v46 = vmul.f32 %v3411_v29, %v3411_v29  ;;  %2255 = vpow2.f32 %v1094_v10 }
 0x169   : > { %4025 = vst [vmem:[#allocation56_spill] sm:$0xff] %v3415_v40  ;;  %v2242_v9 = vpop.eup %2241  ;;  %v686_v52 = vmul.f32 %v3415_v40, %v3415_v40  ;;  %v3424_v48 = vadd.f32 %v3167_v14, %v3006_v27  ;;  %v3428_v2 = vadd.f32 %v3169_v3, %v3008_v7  ;;  %2257 = vrcp.f32 %v1185_v19 }
 0x16a   : > { %v1186_v63 = vadd.f32 1.0, %v2238_v56  ;;  %v1188_v54 = vadd.f32 1.0, %v2240_v8  ;;  %v749_v41 = vmul.f32 %v685_v46, %v3411_v29  ;;  %2259 = vpow2.f32 %v1092_v31 }
 0x16b   : > { %4026 = vst [vmem:[#allocation57_spill] sm:$0xff] %v3424_v48  ;;  %v1004_v49 = vsub.f32 0.0, %v940_v50  ;;  %v750_v58 = vmul.f32 %v686_v52, %v3415_v40  ;;  %v688_v6 = vmul.f32 %v3424_v48, %v3424_v48  ;;  %v3434_v22 = vpop.eup %2243  ;;  %2261 = vpow2.f32 %v1096_v42 }
 0x16c   : > { %v939_v14 = vmul.f32 1.5957692, %v875_v12  ;;  %v813_v11 = vmul.f32 0.044715, %v749_v41  ;;  %v687_v3 = vmul.f32 %v3428_v2, %v3428_v2  ;;  %2263 = vpow2.f32 %v1098_v5 }
 0x16d   : > { %v3438_v4 = vpop.eup %2245  ;;  %v814_v56 = vmul.f32 0.044715, %v750_v58  ;;  %v752_v32 = vmul.f32 %v688_v6, %v3424_v48  ;;  %v3443_v10 = vadd.f32 %v3175_v24, %v3010_v28  ;;  %2265 = vrcp.f32 %v1186_v63 }
 0x16e   : > { %v2248_v47 = vpop.eup %2247  ;;  %v1187_v8 = vadd.f32 1.0, %v2242_v9  ;;  %v877_v19 = vadd.f32 %v813_v11, %v3411_v29  ;;  %v751_v25 = vmul.f32 %v687_v3, %v3428_v2  ;;  %v1102_v50 = vmul.f32 1.442695, %v1004_v49 }
 0x16f   : > { %v3447_v31 = vpop.eup %2249  ;;  %v816_v42 = vmul.f32 0.044715, %v752_v32  ;;  %v689_v5 = vmul.f32 %v3443_v10, %v3443_v10  ;;  %v3453_v12 = vadd.f32 %v3189_v45, %v3004_v26  ;;  %v878_v52 = vadd.f32 %v814_v56, %v3415_v40 }
 0x170   : > { %v2252_v24 = vpop.eup %2251  ;;  %v941_v46 = vmul.f32 1.5957692, %v877_v19  ;;  %v815_v9 = vmul.f32 0.044715, %v751_v25  ;;  %v3458_v63 = vadd.f32 %v3193_v38, %v3006_v27  ;;  %v1003_v49 = vsub.f32 0.0, %v939_v14 }
 0x171   : > { %4027 = vst [vmem:[#allocation58_spill] sm:$0xff] %v3453_v12  ;;  %v3460_v41 = vpop.eup %2253  ;;  %v880_v58 = vadd.f32 %v816_v42, %v3424_v48  ;;  %v753_v6 = vmul.f32 %v689_v5, %v3443_v10  ;;  %v690_v45 = vmul.f32 %v3453_v12, %v3453_v12  ;;  %2267 = vrcp.f32 %v1188_v54 }
 0x172   : > { %4028 = vst [vmem:[#allocation59_spill] sm:$0xff] %v3458_v63  ;;  %v1189_v11 = vadd.f32 1.0, %v2248_v47  ;;  %v879_v3 = vadd.f32 %v815_v9, %v3428_v2  ;;  %v692_v56 = vmul.f32 %v3458_v63, %v3458_v63  ;;  %v2256_v32 = vpop.eup %2255  ;;  %v1190_v38 = vadd.f32 1.0, %v2252_v24 }
 0x173   : > { %2269 = vpow2.f32 %v1102_v50  ;;  %v1005_v19 = vsub.f32 0.0, %v941_v46  ;;  %v817_v25 = vmul.f32 0.044715, %v753_v6  ;;  %v3469_v14 = vpop.eup %2257  ;;  %v942_v42 = vmul.f32 1.5957692, %v878_v52 }
 0x174   : > { %v944_v48 = vmul.f32 1.5957692, %v880_v58  ;;  %v754_v5 = vmul.f32 %v690_v45, %v3453_v12  ;;  %v756_v40 = vmul.f32 %v692_v56, %v3458_v63  ;;  %v2260_v54 = vpop.eup %2259  ;;  %v3475_v47 = vmul.f32 %v3180_v39, %v3013_v30 }
 0x175   : > { %2271 = vrcp.f32 %v1187_v8  ;;  %v1100_v9 = vmul.f32 1.442695, %v1003_v49  ;;  %v3479_v50 = vadd.f32 %v3195_v44, %v3008_v7  ;;  %v2262_v24 = vpop.eup %2261  ;;  %v3483_v46 = vmul.f32 %v3191_v51, %v3016_v33 }
 0x176   : > { %2273 = vrcp.f32 %v1189_v11  ;;  %v1192_v52 = vadd.f32 1.0, %v2256_v32  ;;  %v943_v58 = vmul.f32 1.5957692, %v879_v3  ;;  %v2264_v6 = vpop.eup %2263  ;;  %v1104_v45 = vmul.f32 1.442695, %v1005_v19 }
 0x177   : > { %4029 = vst [vmem:[#allocation60_spill] sm:$0xff] %v3479_v50  ;;  %2275 = vrcp.f32 %v1190_v38  ;;  %v881_v30 = vadd.f32 %v817_v25, %v3443_v10  ;;  %v818_v39 = vmul.f32 0.044715, %v754_v5  ;;  %v3486_v8 = vpop.eup %2265  ;;  %v1191_v49 = vadd.f32 1.0, %v2260_v54 }
 0x178   : > { %v1006_v56 = vsub.f32 0.0, %v942_v42  ;;  %v1008_v44 = vsub.f32 0.0, %v944_v48  ;;  %v820_v0 = vmul.f32 0.044715, %v756_v40  ;;  %v1193_v23 = vadd.f32 1.0, %v2262_v24 }
 0x179   : > { %2277 = vpow2.f32 %v1100_v9  ;;  %v882_v33 = vadd.f32 %v818_v39, %v3453_v12  ;;  %v691_v51 = vmul.f32 %v3479_v50, %v3479_v50  ;;  %v1194_v11 = vadd.f32 1.0, %v2264_v6 }
 0x17a   : > { %2279 = vrcp.f32 %v1192_v52  ;;  %v1007_v3 = vsub.f32 0.0, %v943_v58  ;;  %v3493_v32 = vadd.f32 %v3200_v55, %v3010_v28  ;;  %v945_v38 = vmul.f32 1.5957692, %v881_v30 }
 0x17b   : > { %2281 = vpow2.f32 %v1104_v45  ;;  %v884_v19 = vadd.f32 %v820_v0, %v3458_v63  ;;  %v755_v40 = vmul.f32 %v691_v51, %v3479_v50  ;;  %v3497_v48 = vpop.eup %2267  ;;  %v1106_v25 = vmul.f32 1.442695, %v1006_v56 }
 0x17c   : > { %4030 = vst [vmem:[#allocation61_spill] sm:$0xff] %v3493_v32  ;;  %2283 = vrcp.f32 %v1191_v49  ;;  %v1110_v42 = vmul.f32 1.442695, %v1008_v44  ;;  %v693_v5 = vmul.f32 %v3493_v32, %v3493_v32  ;;  %v946_v9 = vmul.f32 1.5957692, %v882_v33 }
 0x17d   : > { %v2270_v54 = vpop.eup %2269  ;;  %2285 = vrcp.f32 %v1193_v23  ;;  %v819_v24 = vmul.f32 0.044715, %v755_v40  ;;  %v3503_v55 = vadd.f32 %v3218_v36, %v3004_v26  ;;  %v1108_v0 = vmul.f32 1.442695, %v1007_v3 }
 0x17e   : > { %2287 = vrcp.f32 %v1194_v11  ;;  %v757_v52 = vmul.f32 %v693_v5, %v3493_v32  ;;  %v3508_v58 = vadd.f32 %v3223_v15, %v3006_v27  ;;  %v1009_v45 = vsub.f32 0.0, %v945_v38 }
 0x17f   : > { %4031 = vst [vmem:[#allocation62_spill] sm:$0xff] %v3503_v55  ;;  %v3510_v6 = vpop.eup %2271  ;;  %v948_v30 = vmul.f32 1.5957692, %v884_v19  ;;  %v883_v23 = vadd.f32 %v819_v24, %v3479_v50  ;;  %v694_v39 = vmul.f32 %v3503_v55, %v3503_v55  ;;  %v1196_v36 = vadd.f32 1.0, %v2270_v54 }
 0x180   : > { %4032 = vst [vmem:[#allocation63_spill] sm:$0xff] %v3508_v58  ;;  %v3515_v49 = vpop.eup %2273  ;;  %v821_v56 = vmul.f32 0.044715, %v757_v52  ;;  %v696_v44 = vmul.f32 %v3508_v58, %v3508_v58  ;;  %v1229_v15 = vmul.f32 %v3197_v62, %v3019_v34  ;;  %2289 = vpow2.f32 %v1106_v25  ;;  %v4033_v62 = vld [vmem:[#allocation24_spill] sm:$0xff] }
 0x181   : > { %v3521_v33 = vpop.eup %2275  ;;  %v1010_v51 = vsub.f32 0.0, %v946_v9  ;;  %v947_v11 = vmul.f32 1.5957692, %v883_v23  ;;  %v758_v3 = vmul.f32 %v694_v39, %v3503_v55  ;;  %2291 = vpow2.f32 %v1110_v42  ;;  %v4035_v23 = vld [vmem:[#allocation26_spill] sm:$0xff] }
 0x182   : > { %v885_v38 = vadd.f32 %v821_v56, %v3493_v32  ;;  %v760_v19 = vmul.f32 %v696_v44, %v3508_v58  ;;  %1489 = vmatprep.mubr.f32.mxu0 %v1229_v15  ;;  %v1233_v40 = vmul.f32 %v3202_v17, %v3024_v37  ;;  %v1112_v54 = vmul.f32 1.442695, %v1009_v45  ;;  %v4037_v37 = vld [vmem:[#allocation28_spill] sm:$0xff] }
 0x183   : > { %v2278_v5 = vpop.eup %2277  ;;  %v1012_v24 = vsub.f32 0.0, %v948_v30  ;;  %v822_v34 = vmul.f32 0.044715, %v758_v3  ;;  %v3530_v25 = vadd.f32 %v4033_v62, %v3008_v7  ;;  %1490 = vmatmul.mubr.f32.vlgmr.msra.gmra.mrb[32].mxu0 %v3475_v47  ;;  %v3537_v39 = vadd.f32 %v4035_v23, %v3010_v28 }
 0x184   : > { %v3533_v9 = vpop.eup %2279  ;;  %v949_v42 = vmul.f32 1.5957692, %v885_v38  ;;  %v824_v52 = vmul.f32 0.044715, %v760_v19  ;;  %1634 = vmatprep.mubr.f32.mxu1 %v1233_v40  ;;  %v3541_v17 = vadd.f32 %v4037_v37, %v3004_v26  ;;  %v1114_v30 = vmul.f32 1.442695, %v1010_v51 }
 0x185   : > { %4034 = vst [vmem:[#allocation24_spill] sm:$0xff] %v3530_v25  ;;  %4036 = vst [vmem:[#allocation26_spill] sm:$0xff] %v3537_v39  ;;  %v2282_v45 = vpop.eup %2281  ;;  %v1011_v56 = vsub.f32 0.0, %v947_v11  ;;  %v886_v44 = vadd.f32 %v822_v34, %v3503_v55  ;;  %v695_v47 = vmul.f32 %v3530_v25, %v3530_v25  ;;  %1635 = vmatmul.mubr.f32.vlgmr.msra.gmra.mrb[32].mxu1 %v3483_v46  ;;  %2293 = vpow2.f32 %v1108_v0 }
 0x186   : > { %4038 = vst [vmem:[#allocation28_spill] sm:$0xff] %v3541_v17  ;;  %v3547_v15 = vpop.eup %2283  ;;  %v1013_v3 = vsub.f32 0.0, %v949_v42  ;;  %v888_v38 = vadd.f32 %v824_v52, %v3508_v58  ;;  %v697_v19 = vmul.f32 %v3537_v39, %v3537_v39  ;;  %v1118_v51 = vmul.f32 1.442695, %v1012_v24 }
 0x187   : > { %v3552_v40 = vpop.eup %2285  ;;  %v950_v11 = vmul.f32 1.5957692, %v886_v44  ;;  %v759_v34 = vmul.f32 %v695_v47, %v3530_v25  ;;  %v698_v62 = vmul.f32 %v3541_v17, %v3541_v17  ;;  %v1195_v46 = vadd.f32 1.0, %v2278_v5 }
 0x188   : > { %v3557_v23 = vpop.eup %2287  ;;  %2295 = vpow2.f32 %v1112_v54  ;;  %v952_v0 = vmul.f32 1.5957692, %v888_v38  ;;  %v761_v42 = vmul.f32 %v697_v19, %v3537_v39  ;;  %v1116_v52 = vmul.f32 1.442695, %v1011_v56 }
 0x189   : > { %2297 = vpow2.f32 %v1114_v30  ;;  %v1014_v37 = vsub.f32 0.0, %v950_v11  ;;  %v823_v58 = vmul.f32 0.044715, %v759_v34  ;;  %v1120_v55 = vmul.f32 1.442695, %v1013_v3  ;;  %v4041_v3 = vld [vmem:[#allocation25_spill] sm:$0xff] }
 0x18a   : > { %2299 = vrcp.f32 %v1196_v36  ;;  %v825_v24 = vmul.f32 0.044715, %v761_v42  ;;  %v2290_v44 = vpop.eup %2289  ;;  %v1197_v63 = vadd.f32 1.0, %v2282_v45  ;;  %v762_v12 = vmul.f32 %v698_v62, %v3541_v17  ;;  %v4040_v45 = vld [vmem:[#allocation7_spill] sm:$0xff]  ;;  %v4042_v11 = vld [vmem:[#allocation8_spill] sm:$0xff] }
 0x18b   : > { %2301 = vpow2.f32 %v1118_v51  ;;  %v887_v47 = vadd.f32 %v823_v58, %v3530_v25  ;;  %v2292_v32 = vpop.eup %2291  ;;  %v1122_v5 = vmul.f32 1.442695, %v1014_v37  ;;  %v1016_v54 = vsub.f32 0.0, %v952_v0 }
 0x18c   : > { %2303 = vrcp.f32 %v1195_v46  ;;  %v889_v30 = vadd.f32 %v825_v24, %v3537_v39  ;;  %v826_v56 = vmul.f32 0.044715, %v762_v12  ;;  %v3565_v36 = vadd.f32 %v3246_v57, %v3006_v27 }
 0x18d   : > { %2305 = vpow2.f32 %v1116_v52  ;;  %v951_v38 = vmul.f32 1.5957692, %v887_v47  ;;  %v1237_v19 = vmul.f32 %v4041_v3, %v4040_v45  ;;  %v1198_v58 = vadd.f32 1.0, %v2290_v44  ;;  %v4048_v47 = vld [vmem:[#allocation23_spill] sm:$0xff] }
 0x18e   : > { %2307 = vpow2.f32 %v1120_v55  ;;  %4039 = vst [vmem:[#allocation64_spill] sm:$0xff] %v3565_v36  ;;  %v1200_v51 = vadd.f32 1.0, %v2292_v32  ;;  %v1241_v34 = vmul.f32 %v3274_v59, %v4042_v11  ;;  %v1126_v46 = vmul.f32 1.442695, %v1016_v54  ;;  %v4045_v59 = vld [vmem:[#allocation5_spill] sm:$0xff]  ;;  %v4046_v32 = vld [vmem:[#allocation20_spill] sm:$0xff] }
 0x18f   : > { %2309 = vrcp.f32 %v1197_v63  ;;  %v2294_v62 = vpop.eup %2293  ;;  %v700_v12 = vmul.f32 %v3565_v36, %v3565_v36  ;;  %1494 = vmatprep.mubr.f32.mxu0 %v1237_v19  ;;  %v3575_v57 = vadd.f32 %v3248_v16, %v3008_v7  ;;  %v953_v55 = vmul.f32 1.5957692, %v889_v30  ;;  %v4047_v16 = vld [vmem:[#allocation6_spill] sm:$0xff] }
 0x190   : > { %2311 = vpow2.f32 %v1122_v5  ;;  %v890_v0 = vadd.f32 %v826_v56, %v3541_v17  ;;  %1639 = vmatprep.mubr.f32.mxu1 %v1241_v34  ;;  %v3580_v63 = vadd.f32 %v3250_v18, %v3010_v28  ;;  %v1235_v42 = vmul.f32 %v4046_v32, %v4045_v59 }
 0x191   : > { %4043 = vst [vmem:[#allocation7_spill] sm:$0xff] %v3575_v57  ;;  %v1015_v37 = vsub.f32 0.0, %v951_v38  ;;  %v764_v24 = vmul.f32 %v700_v12, %v3565_v36  ;;  %v699_v44 = vmul.f32 %v3575_v57, %v3575_v57  ;;  %v1239_v5 = vmul.f32 %v4048_v47, %v4047_v16  ;;  %v4051_v16 = vld [vmem:[#allocation46_spill] sm:$0xff] }
 0x192   : > { %4044 = vst [vmem:[#allocation25_spill] sm:$0xff] %v3580_v63  ;;  %v2296_v52 = vpop.eup %2295  ;;  %2313 = vrcp.f32 %v1198_v58  ;;  %v701_v30 = vmul.f32 %v3580_v63, %v3580_v63  ;;  %1495 = vmatmul.mubr.f32.gmra.mrb[34].mxu0 %v1235_v42  ;;  %v1199_v56 = vadd.f32 1.0, %v2294_v62  ;;  %v3595_v38 = vadd.f32 %v3253_v53, %v3004_v26 }
 0x193   : > { %v2298_v54 = vpop.eup %2297  ;;  %2315 = vpow2.f32 %v1126_v46  ;;  %v828_v45 = vmul.f32 0.044715, %v764_v24  ;;  %1640 = vmatmul.mubr.f32.gmra.mrb[34].mxu1 %v1239_v5  ;;  %v1201_v19 = vadd.f32 1.0, %v2296_v52  ;;  %v1017_v11 = vsub.f32 0.0, %v953_v55  ;;  %v4050_v24 = vld [vmem:[#allocation11_spill] sm:$0xff]  ;;  %v4052_v55 = vld [vmem:[#allocation12_spill] sm:$0xff] }
 0x194   : > { %v3591_v18 = vpop.eup %2299  ;;  %4049 = vst [vmem:[#allocation8_spill] sm:$0xff] %v3595_v38  ;;  %v954_v34 = vmul.f32 1.5957692, %v890_v0  ;;  %v763_v58 = vmul.f32 %v699_v44, %v3575_v57  ;;  %2317 = vrcp.f32 %v1200_v51  ;;  %v1202_v59 = vadd.f32 1.0, %v2298_v54  ;;  %v4053_v0 = vld [vmem:[#allocation47_spill] sm:$0xff]  ;;  %v4054_v51 = vld [vmem:[#allocation29_spill] sm:$0xff] }
 0x195   : > { %v2302_v3 = vpop.eup %2301  ;;  %v1124_v32 = vmul.f32 1.442695, %v1015_v37  ;;  %v765_v62 = vmul.f32 %v701_v30, %v3580_v63  ;;  %v892_v42 = vadd.f32 %v828_v45, %v3565_v36  ;;  %v702_v53 = vmul.f32 %v3595_v38, %v3595_v38 }
 0x196   : > { %v3598_v12 = vpop.eup %2303  ;;  %v1245_v52 = vmul.f32 %v4051_v16, %v4050_v24  ;;  %v1249_v47 = vmul.f32 %v4053_v0, %v4052_v55  ;;  %2319 = vrcp.f32 %v1199_v56  ;;  %v1204_v5 = vadd.f32 1.0, %v2302_v3  ;;  %v4056_v55 = vld [vmem:[#allocation30_spill] sm:$0xff] }
 0x197   : > { %v2306_v46 = vpop.eup %2305  ;;  %v3610_v37 = vadd.f32 %v4054_v51, %v3006_v27  ;;  %2321 = vrcp.f32 %v1201_v19  ;;  %v1128_v30 = vmul.f32 1.442695, %v1017_v11  ;;  %v1018_v45 = vsub.f32 0.0, %v954_v34  ;;  %v4058_v34 = vld [vmem:[#allocation31_spill] sm:$0xff] }
 0x198   : > { %v2308_v44 = vpop.eup %2307  ;;  %v827_v36 = vmul.f32 0.044715, %v763_v58  ;;  %1499 = vmatprep.mubr.f32.mxu0 %v1245_v52  ;;  %1644 = vmatprep.mubr.f32.mxu1 %v1249_v47  ;;  %v1203_v24 = vadd.f32 1.0, %v2306_v46  ;;  %2323 = vpow2.f32 %v1124_v32  ;;  %v829_v16 = vmul.f32 0.044715, %v765_v62 }
 0x199   : > { %4055 = vst [vmem:[#allocation5_spill] sm:$0xff] %v3610_v37  ;;  %v3612_v54 = vpop.eup %2309  ;;  %v3616_v56 = vadd.f32 %v4056_v55, %v3008_v7  ;;  %2325 = vrcp.f32 %v1202_v59  ;;  %v1205_v3 = vadd.f32 1.0, %v2308_v44  ;;  %v956_v0 = vmul.f32 1.5957692, %v892_v42 }
 0x19a   : > { %v2312_v17 = vpop.eup %2311  ;;  %v766_v51 = vmul.f32 %v702_v53, %v3595_v38  ;;  %2327 = vrcp.f32 %v1204_v5  ;;  %v704_v19 = vmul.f32 %v3610_v37, %v3610_v37  ;;  %v3625_v58 = vadd.f32 %v4058_v34, %v3010_v28 }
 0x19b   : > { %4057 = vst [vmem:[#allocation20_spill] sm:$0xff] %v3616_v56  ;;  %v703_v11 = vmul.f32 %v3616_v56, %v3616_v56  ;;  %2329 = vpow2.f32 %v1128_v30  ;;  %v1130_v62 = vmul.f32 1.442695, %v1018_v45  ;;  %v891_v59 = vadd.f32 %v827_v36, %v3575_v57  ;;  %v4062_v45 = vld [vmem:[#allocation9_spill] sm:$0xff]  ;;  %v4063_v36 = vld [vmem:[#allocation40_spill] sm:$0xff] }
 0x19c   : > { %4059 = vst [vmem:[#allocation6_spill] sm:$0xff] %v3625_v58  ;;  %v3627_v32 = vpop.eup %2313  ;;  %2331 = vrcp.f32 %v1203_v24  ;;  %v893_v42 = vadd.f32 %v829_v16, %v3580_v63  ;;  %v1206_v52 = vadd.f32 1.0, %v2312_v17  ;;  %v1020_v47 = vsub.f32 0.0, %v956_v0  ;;  %v4064_v63 = vld [vmem:[#allocation10_spill] sm:$0xff] }
 0x19d   : > { %4060 = vst [vmem:[#allocation23_spill] sm:$0xff] %v3627_v32  ;;  %v2316_v46 = vpop.eup %2315  ;;  %v767_v53 = vmul.f32 %v703_v11, %v3616_v56  ;;  %2333 = vrcp.f32 %v1205_v3  ;;  %v830_v44 = vmul.f32 0.044715, %v766_v51  ;;  %v768_v55 = vmul.f32 %v704_v19, %v3610_v37  ;;  %v4065_v11 = vld [vmem:[#allocation44_spill] sm:$0xff] }
 0x19e   : > { %v3632_v5 = vpop.eup %2317  ;;  %v705_v30 = vmul.f32 %v3625_v58, %v3625_v58  ;;  %v1243_v57 = vmul.f32 %v4063_v36, %v4062_v45  ;;  %v1208_v24 = vadd.f32 1.0, %v2316_v46  ;;  %2335 = vpow2.f32 %v1130_v62 }
 0x19f   : > { %4061 = vst [vmem:[#allocation11_spill] sm:$0xff] %v3632_v5  ;;  %v831_v34 = vmul.f32 0.044715, %v767_v53  ;;  %v955_v16 = vmul.f32 1.5957692, %v891_v59  ;;  %v1247_v3 = vmul.f32 %v4065_v11, %v4064_v63  ;;  %v4066_v53 = vld [vmem:[#allocation34_spill] sm:$0xff]  ;;  %2337 = vrcp.f32 %v1206_v52 }
 0x1a0   : > { %v3641_v17 = vpop.eup %2319  ;;  %v3643_v0 = vmul.f32 1.5957692, %v893_v42  ;;  %v769_v19 = vmul.f32 %v705_v30, %v3625_v58  ;;  %1500 = vmatmul.mubr.f32.gmra.mrb[36].mxu0 %v1243_v57  ;;  %v3649_v39 = vadd.f32 %v4066_v53, %v3004_v26  ;;  %v1134_v62 = vmul.f32 1.442695, %v1020_v47  ;;  %v4067_v30 = vld [vmem:[#allocation35_spill] sm:$0xff]  ;;  %v4071_v47 = vld [vmem:[#allocation16_spill] sm:$0xff] }
 0x1a1   : > { %v895_v51 = vadd.f32 %v831_v34, %v3616_v56  ;;  %v3651_v45 = vpop.eup %2321  ;;  %v894_v59 = vadd.f32 %v830_v44, %v3595_v38  ;;  %1645 = vmatmul.mubr.f32.gmra.mrb[36].mxu1 %v1247_v3  ;;  %v832_v46 = vmul.f32 0.044715, %v768_v55  ;;  %v3658_v57 = vadd.f32 %v4067_v30, %v3006_v27  ;;  %v4070_v53 = vld [vmem:[#allocation15_spill] sm:$0xff] }
 0x1a2   : > { %v2324_v63 = vpop.eup %2323  ;;  %v833_v42 = vmul.f32 0.044715, %v769_v19  ;;  %v706_v34 = vmul.f32 %v3649_v39, %v3649_v39  ;;  %2339 = vrcp.f32 %v1208_v24  ;;  %v1019_v11 = vsub.f32 0.0, %v955_v16 }
 0x1a3   : > { %4068 = vst [vmem:[#allocation46_spill] sm:$0xff] %v3658_v57  ;;  %v3660_v36 = vpop.eup %2325  ;;  %v1253_v52 = vmul.f32 %v3359_v60, %v4070_v53  ;;  %v1257_v44 = vmul.f32 %v3385_v43, %v4071_v47  ;;  %v1021_v55 = vsub.f32 0.0, %v3643_v0  ;;  %v959_v19 = vmul.f32 1.5957692, %v895_v51  ;;  %v4073_v60 = vld [vmem:[#allocation36_spill] sm:$0xff]  ;;  %v4074_v43 = vld [vmem:[#allocation38_spill] sm:$0xff] }
 0x1a4   : > { %4069 = vst [vmem:[#allocation12_spill] sm:$0xff] %v3660_v36  ;;  %v3666_v3 = vpop.eup %2327  ;;  %v897_v38 = vadd.f32 %v833_v42, %v3625_v58  ;;  %v770_v30 = vmul.f32 %v706_v34, %v3649_v39  ;;  %v1207_v25 = vadd.f32 1.0, %v2324_v63  ;;  %v708_v24 = vmul.f32 %v3658_v57, %v3658_v57  ;;  %v4076_v63 = vld [vmem:[#allocation13_spill] sm:$0xff]  ;;  %v4077_v34 = vld [vmem:[#allocation48_spill] sm:$0xff] }
 0x1a5   : > { %4072 = vst [vmem:[#allocation47_spill] sm:$0xff] %v3666_v3  ;;  %v2330_v56 = vpop.eup %2329  ;;  %1504 = vmatprep.mubr.f32.mxu0 %v1253_v52  ;;  %1649 = vmatprep.mubr.f32.mxu1 %v1257_v44  ;;  %v3675_v16 = vadd.f32 %v4073_v60, %v3008_v7  ;;  %v3679_v53 = vadd.f32 %v4074_v43, %v3010_v28  ;;  %2341 = vpow2.f32 %v1134_v62  ;;  %v958_v51 = vmul.f32 1.5957692, %v894_v59  ;;  %v4079_v59 = vld [vmem:[#allocation14_spill] sm:$0xff] }
 0x1a6   : > { %v3681_v0 = vpop.eup %2331  ;;  %v896_v42 = vadd.f32 %v832_v46, %v3610_v37  ;;  %v1251_v47 = vmul.f32 %v4077_v34, %v4076_v63  ;;  %v834_v52 = vmul.f32 0.044715, %v770_v30  ;;  %v772_v44 = vmul.f32 %v708_v24, %v3658_v57  ;;  %v4080_v46 = vld [vmem:[#allocation50_spill] sm:$0xff] }
 0x1a7   : > { %4075 = vst [vmem:[#allocation29_spill] sm:$0xff] %v3681_v0  ;;  %v3686_v58 = vpop.eup %2333  ;;  %v707_v60 = vmul.f32 %v3675_v16, %v3675_v16  ;;  %v709_v43 = vmul.f32 %v3679_v53, %v3679_v53  ;;  %v1209_v3 = vadd.f32 1.0, %v2330_v56  ;;  %v1132_v36 = vmul.f32 1.442695, %v1019_v11  ;;  %v4081_v0 = vld [vmem:[#allocation39_spill] sm:$0xff]  ;;  %v4082_v56 = vld [vmem:[#allocation42_spill] sm:$0xff] }
 0x1a8   : > { %4078 = vst [vmem:[#allocation30_spill] sm:$0xff] %v3686_v58  ;;  %v1023_v62 = vsub.f32 0.0, %v959_v19  ;;  %1505 = vmatmul.mubr.f32.gmra.mrb[38].mxu0 %v1251_v47  ;;  %v1255_v37 = vmul.f32 %v4080_v46, %v4079_v59  ;;  %v2336_v5 = vpop.eup %2335  ;;  %v961_v63 = vmul.f32 1.5957692, %v897_v38  ;;  %v836_v34 = vmul.f32 0.044715, %v772_v44 }
 0x1a9   : > { %v771_v30 = vmul.f32 %v707_v60, %v3675_v16  ;;  %v773_v24 = vmul.f32 %v709_v43, %v3679_v53  ;;  %v1022_v32 = vsub.f32 0.0, %v958_v51  ;;  %v960_v58 = vmul.f32 1.5957692, %v896_v42  ;;  %v3705_v19 = vpop.eup %2337 }
 0x1aa   : > { %1650 = vmatmul.mubr.f32.gmra.mrb[38].mxu1 %v1255_v37  ;;  %v3699_v50 = vadd.f32 %v4081_v0, %v3004_v26  ;;  %v3703_v11 = vadd.f32 %v4082_v56, %v3006_v27  ;;  %2343 = vrcp.f32 %v1207_v25  ;;  %v898_v38 = vadd.f32 %v834_v52, %v3649_v39 }
 0x1ab   : > { %v835_v47 = vmul.f32 0.044715, %v771_v30  ;;  %v837_v44 = vmul.f32 0.044715, %v773_v24  ;;  %2345 = vpow2.f32 %v1132_v36  ;;  %v1136_v60 = vmul.f32 1.442695, %v1021_v55 }
 0x1ac   : > { %v1140_v51 = vmul.f32 1.442695, %v1023_v62  ;;  %v710_v37 = vmul.f32 %v3699_v50, %v3699_v50  ;;  %v3710_v42 = vpop.eup %2339  ;;  %v1025_v26 = vsub.f32 0.0, %v961_v63  ;;  %v900_v0 = vadd.f32 %v836_v34, %v3658_v57 }
 0x1ad   : > { %v899_v27 = vadd.f32 %v835_v47, %v3675_v16  ;;  %v901_v43 = vadd.f32 %v837_v44, %v3679_v53  ;;  %v1138_v25 = vmul.f32 1.442695, %v1022_v32  ;;  %v1024_v59 = vsub.f32 0.0, %v960_v58 }
 0x1ae   : > { %v774_v52 = vmul.f32 %v710_v37, %v3699_v50  ;;  %v712_v36 = vmul.f32 %v3703_v11, %v3703_v11  ;;  %2347 = vrcp.f32 %v1209_v3  ;;  %v962_v55 = vmul.f32 1.5957692, %v898_v38  ;;  %v4083_v37 = vld [vmem:[#allocation19_spill] sm:$0xff] }
 0x1af   : > { %v963_v62 = vmul.f32 1.5957692, %v899_v27  ;;  %v965_v46 = vmul.f32 1.5957692, %v901_v43  ;;  %v3718_v30 = vpop.eup %2341  ;;  %2349 = vpow2.f32 %v1136_v60  ;;  %v1144_v24 = vmul.f32 1.442695, %v1025_v26 }
 0x1b0   : > { %v838_v63 = vmul.f32 0.044715, %v774_v52  ;;  %v776_v34 = vmul.f32 %v712_v36, %v3703_v11  ;;  %2351 = vpow2.f32 %v1140_v51  ;;  %v964_v56 = vmul.f32 1.5957692, %v900_v0  ;;  %v4084_v52 = vld [vmem:[#allocation21_spill] sm:$0xff]  ;;  %v4085_v26 = vld [vmem:[#allocation43_spill] sm:$0xff] }
 0x1b1   : > { %v1027_v32 = vsub.f32 0.0, %v963_v62  ;;  %v1029_v58 = vsub.f32 0.0, %v965_v46  ;;  %v1261_v3 = vmul.f32 %v3404_v20, %v4083_v37  ;;  %v1210_v38 = vadd.f32 1.0, %v2336_v5  ;;  %v4086_v20 = vld [vmem:[#allocation45_spill] sm:$0xff] }
 0x1b2   : > { %v902_v47 = vadd.f32 %v838_v63, %v3699_v50  ;;  %v840_v44 = vmul.f32 0.044715, %v776_v34  ;;  %2353 = vpow2.f32 %v1138_v25  ;;  %v1142_v27 = vmul.f32 1.442695, %v1024_v59  ;;  %v4087_v25 = vld [vmem:[#allocation17_spill] sm:$0xff] }
 0x1b3   : > { %v1026_v43 = vsub.f32 0.0, %v962_v55  ;;  %1509 = vmatprep.mubr.f32.mxu0 %v1261_v3  ;;  %v1265_v51 = vmul.f32 %v3434_v22, %v4084_v52  ;;  %v3729_v0 = vadd.f32 %v4085_v26, %v3008_v7  ;;  %v1148_v62 = vmul.f32 1.442695, %v1027_v32  ;;  %v4088_v55 = vld [vmem:[#allocation18_spill] sm:$0xff]  ;;  %v4092_v52 = vld [vmem:[#allocation27_spill] sm:$0xff] }
 0x1b4   : > { %v966_v57 = vmul.f32 1.5957692, %v902_v47  ;;  %v904_v60 = vadd.f32 %v840_v44, %v3703_v11  ;;  %v3731_v36 = vpop.eup %2343  ;;  %v3735_v5 = vadd.f32 %v4086_v20, %v3010_v28  ;;  %v1259_v59 = vmul.f32 %v3387_v13, %v4087_v25  ;;  %v4089_v47 = vld [vmem:[#allocation32_spill] sm:$0xff] }
 0x1b5   : > { %v1263_v46 = vmul.f32 %v3398_v61, %v4088_v55  ;;  %v2346_v63 = vpop.eup %2345  ;;  %2355 = vpow2.f32 %v1144_v24  ;;  %v1028_v22 = vsub.f32 0.0, %v964_v56  ;;  %v1152_v34 = vmul.f32 1.442695, %v1029_v58  ;;  %1654 = vmatprep.mubr.f32.mxu1 %v1265_v51  ;;  %v4090_v56 = vld [vmem:[#allocation33_spill] sm:$0xff]  ;;  %v4093_v55 = vld [vmem:[#allocation52_spill] sm:$0xff] }
 0x1b6   : > { %v711_v7 = vmul.f32 %v3729_v0, %v3729_v0  ;;  %2357 = vpow2.f32 %v1142_v27  ;;  %v968_v32 = vmul.f32 1.5957692, %v904_v60  ;;  %v713_v28 = vmul.f32 %v3735_v5, %v3735_v5  ;;  %1510 = vmatmul.mubr.f32.gmra.mrb[40].mxu0 %v1259_v59  ;;  %v4091_v27 = vld [vmem:[#allocation22_spill] sm:$0xff] }
 0x1b7   : > { %1655 = vmatmul.mubr.f32.gmra.mrb[40].mxu1 %v1263_v46  ;;  %v1269_v13 = vmul.f32 %v3460_v41, %v4089_v47  ;;  %v1146_v44 = vmul.f32 1.442695, %v1026_v43  ;;  %v1030_v61 = vsub.f32 0.0, %v966_v57  ;;  %v1273_v58 = vmul.f32 %v3469_v14, %v4090_v56 }
 0x1b8   : > { %v775_v24 = vmul.f32 %v711_v7, %v3729_v0  ;;  %v3750_v37 = vpop.eup %2347  ;;  %2359 = vpow2.f32 %v1148_v62  ;;  %v777_v3 = vmul.f32 %v713_v28, %v3735_v5  ;;  %v1267_v60 = vmul.f32 %v3438_v4, %v4091_v27 }
 0x1b9   : > { %1514 = vmatprep.mubr.f32.mxu0 %v1269_v13  ;;  %v1271_v51 = vmul.f32 %v3447_v31, %v4092_v52  ;;  %v2350_v41 = vpop.eup %2349  ;;  %v1150_v43 = vmul.f32 1.442695, %v1028_v22  ;;  %2361 = vpow2.f32 %v1152_v34  ;;  %1659 = vmatprep.mubr.f32.mxu1 %v1273_v58  ;;  %v1277_v14 = vmul.f32 %v3510_v6, %v3313_v21  ;;  %v4094_v6 = vld [vmem:[#allocation37_spill] sm:$0xff]  ;;  %v4098_v58 = vld [vmem:[#allocation51_spill] sm:$0xff] }
 0x1ba   : > { %v839_v57 = vmul.f32 0.044715, %v775_v24  ;;  %v2352_v26 = vpop.eup %2351  ;;  %v1211_v20 = vadd.f32 1.0, %v2346_v63  ;;  %v1032_v62 = vsub.f32 0.0, %v968_v32  ;;  %v841_v25 = vmul.f32 0.044715, %v777_v3  ;;  %1515 = vmatmul.mubr.f32.gmra.mrb[42].mxu0 %v1267_v60 }
 0x1bb   : > { %1660 = vmatmul.mubr.f32.gmra.mrb[42].mxu1 %v1271_v51  ;;  %v1281_v4 = vmul.f32 %v3515_v49, %v3329_v35  ;;  %2363 = vpow2.f32 %v1146_v44  ;;  %v1154_v59 = vmul.f32 1.442695, %v1030_v61  ;;  %1519 = vmatprep.mubr.f32.mxu0 %v1277_v14  ;;  %v1285_v46 = vmul.f32 %v3547_v15, %v4093_v55  ;;  %v4095_v34 = vld [vmem:[#allocation41_spill] sm:$0xff] }
 0x1bc   : > { %v903_v31 = vadd.f32 %v839_v57, %v3729_v0  ;;  %v2354_v22 = vpop.eup %2353  ;;  %v905_v21 = vadd.f32 %v841_v25, %v3735_v5  ;;  %v1275_v63 = vmul.f32 %v3486_v8, %v4094_v6  ;;  %v1279_v7 = vmul.f32 %v3497_v48, %v4095_v34  ;;  %v4096_v32 = vld [vmem:[#allocation53_spill] sm:$0xff] }
 0x1bd   : > { %1664 = vmatprep.mubr.f32.mxu1 %v1281_v4  ;;  %v1289_v35 = vmul.f32 %v3552_v40, %v4096_v32  ;;  %v1213_v49 = vadd.f32 1.0, %v2350_v41  ;;  %2365 = vpow2.f32 %v1150_v43  ;;  %v1215_v47 = vadd.f32 1.0, %v2352_v26  ;;  %v4100_v43 = vld [vmem:[#allocation55_spill] sm:$0xff]  ;;  %v4107_v55 = vld [vmem:[#allocation57_spill] sm:$0xff]  ;;  %v4109_v32 = vld [vmem:[#allocation24_spill] sm:$0xff] }
 0x1be   : > { %v967_v28 = vmul.f32 1.5957692, %v903_v31  ;;  %2367 = vrcp.f32 %v1210_v38  ;;  %v1158_v13 = vmul.f32 1.442695, %v1032_v62  ;;  %v969_v15 = vmul.f32 1.5957692, %v905_v21  ;;  %1520 = vmatmul.mubr.f32.gmra.mrb[44].mxu0 %v1275_v63 }
 0x1bf   : > { %1665 = vmatmul.mubr.f32.gmra.mrb[44].mxu1 %v1279_v7  ;;  %v2356_v44 = vpop.eup %2355  ;;  %2369 = vpow2.f32 %v1154_v59  ;;  %1524 = vmatprep.mubr.f32.mxu0 %v1285_v46  ;;  %v1293_v8 = vmul.f32 %v3598_v12, %v3396_v1  ;;  %v1297_v48 = vmul.f32 %v3612_v54, %v3411_v29  ;;  %v4097_v38 = vld [vmem:[#allocation49_spill] sm:$0xff]  ;;  %v1287_v3 = vmul.f32 %v3533_v9, %v4098_v58  ;;  %v4099_v54 = vld [vmem:[#allocation54_spill] sm:$0xff]  ;;  %v4106_v59 = vld [vmem:[#allocation23_spill] sm:$0xff] }
 0x1c0   : > { %v1031_v61 = vsub.f32 0.0, %v967_v28  ;;  %1669 = vmatprep.mubr.f32.mxu1 %v1289_v35  ;;  %v2358_v40 = vpop.eup %2357  ;;  %2371 = vrcp.f32 %v1211_v20  ;;  %v1033_v24 = vsub.f32 0.0, %v969_v15  ;;  %v1283_v56 = vmul.f32 %v3521_v33, %v4097_v38  ;;  %v4103_v62 = vld [vmem:[#allocation61_spill] sm:$0xff]  ;;  %v4108_v46 = vld [vmem:[#allocation11_spill] sm:$0xff]  ;;  %v4111_v15 = vld [vmem:[#allocation58_spill] sm:$0xff] }
 0x1c1   : > { %2373 = vrcp.f32 %v1213_v49  ;;  %v1217_v52 = vadd.f32 1.0, %v2356_v44  ;;  %v1212_v29 = vadd.f32 1.0, %v3718_v30  ;;  %v1301_v33 = vmul.f32 %v3641_v17, %v3428_v2  ;;  %v4102_v17 = vld [vmem:[#allocation29_spill] sm:$0xff]  ;;  %v4110_v49 = vld [vmem:[#allocation26_spill] sm:$0xff]  ;;  %v4112_v44 = vld [vmem:[#allocation12_spill] sm:$0xff] }
 0x1c2   : > { %v1156_v27 = vmul.f32 1.442695, %v1031_v61  ;;  %v2360_v60 = vpop.eup %2359  ;;  %2375 = vpow2.f32 %v1158_v13  ;;  %v1160_v51 = vmul.f32 1.442695, %v1033_v24  ;;  %1525 = vmatmul.mubr.f32.gmra.mrb[46].mxu0 %v1283_v56  ;;  %v1305_v9 = vmul.f32 %v3651_v45, %v3443_v10  ;;  %v4101_v10 = vld [vmem:[#allocation60_spill] sm:$0xff] }
 0x1c3   : > { %1670 = vmatmul.mubr.f32.gmra.mrb[46].mxu1 %v1287_v3  ;;  %v2362_v1 = vpop.eup %2361  ;;  %2377 = vrcp.f32 %v1215_v47  ;;  %1529 = vmatprep.mubr.f32.mxu0 %v1293_v8  ;;  %v1214_v12 = vadd.f32 1.0, %v2354_v22  ;;  %v1291_v41 = vmul.f32 %v3557_v23, %v4099_v54  ;;  %v1295_v57 = vmul.f32 %v3591_v18, %v4100_v43  ;;  %v4104_v23 = vld [vmem:[#allocation30_spill] sm:$0xff]  ;;  %v4105_v18 = vld [vmem:[#allocation56_spill] sm:$0xff]  ;;  %v4113_v8 = vld [vmem:[#allocation59_spill] sm:$0xff] }
 0x1c4   : > { %1674 = vmatprep.mubr.f32.mxu1 %v1297_v48  ;;  %2379 = vpow2.f32 %v1156_v27  ;;  %v1219_v26 = vadd.f32 1.0, %v2360_v60  ;;  %v1221_v30 = vadd.f32 1.0, %v2362_v1  ;;  %v1216_v2 = vadd.f32 1.0, %v2358_v40  ;;  %v4114_v48 = vld [vmem:[#allocation47_spill] sm:$0xff]  ;;  %v4116_v27 = vld [vmem:[#allocation25_spill] sm:$0xff]  ;;  %v4117_v1 = vld [vmem:[#allocation62_spill] sm:$0xff] }
 0x1c5   : > { %v2364_v14 = vpop.eup %2363  ;;  %2381 = vpow2.f32 %v1160_v51  ;;  %v1309_v45 = vmul.f32 %v4102_v17, %v4101_v10  ;;  %v1313_v25 = vmul.f32 %v4104_v23, %v4103_v62  ;;  %v1299_v31 = vmul.f32 %v4106_v59, %v4105_v18  ;;  %v4119_v43 = vld [vmem:[#allocation20_spill] sm:$0xff]  ;;  %v4124_v59 = vld [vmem:[#allocation5_spill] sm:$0xff] }
 0x1c6   : > { %2383 = vrcp.f32 %v1217_v52  ;;  %1530 = vmatmul.mubr.f32.gmra.mrb[48].mxu0 %v1291_v41  ;;  %v1303_v22 = vmul.f32 %v4108_v46, %v4107_v55  ;;  %v1218_v6 = vadd.f32 1.0, %v2364_v14  ;;  %v1317_v35 = vmul.f32 %v3731_v36, %v4109_v32  ;;  %v4120_v14 = vld [vmem:[#allocation6_spill] sm:$0xff] }
 0x1c7   : > { %1675 = vmatmul.mubr.f32.gmra.mrb[48].mxu1 %v1295_v57  ;;  %v2366_v20 = vpop.eup %2365  ;;  %2385 = vrcp.f32 %v1212_v29  ;;  %1534 = vmatprep.mubr.f32.mxu0 %v1301_v33  ;;  %v1321_v28 = vmul.f32 %v3750_v37, %v4110_v49  ;;  %v1307_v61 = vmul.f32 %v4112_v44, %v4111_v15  ;;  %v1311_v40 = vmul.f32 %v4114_v48, %v4113_v8  ;;  %v4115_v37 = vld [vmem:[#allocation7_spill] sm:$0xff] }
 0x1c8   : > { %1679 = vmatprep.mubr.f32.mxu1 %v1305_v9  ;;  %v2368_v4 = vpop.eup %2367  ;;  %2387 = vrcp.f32 %v1214_v12  ;;  %v1220_v34 = vadd.f32 1.0, %v2366_v20  ;;  %v1315_v29 = vmul.f32 %v3705_v19, %v4117_v1  ;;  %v4118_v33 = vld [vmem:[#allocation63_spill] sm:$0xff]  ;;  %v4121_v20 = vld [vmem:[#allocation28_spill] sm:$0xff] }
 0x1c9   : > { %v2370_v21 = vpop.eup %2369  ;;  %2389 = vrcp.f32 %v1219_v26  ;;  %v1319_v9 = vmul.f32 %v3710_v42, %v4118_v33  ;;  %v1323_v19 = vmul.f32 %v2368_v4, %v4121_v20 }
 0x1ca   : > { %v2372_v63 = vpop.eup %2371  ;;  %2391 = vrcp.f32 %v1221_v30  ;;  %1535 = vmatmul.mubr.f32.gmra.mrb[50].mxu0 %v1299_v31  ;;  %v1222_v13 = vadd.f32 1.0, %v2370_v21  ;;  %v4125_v21 = vld [vmem:[#allocation46_spill] sm:$0xff] }
 0x1cb   : > { %1680 = vmatmul.mubr.f32.gmra.mrb[50].mxu1 %v1303_v22  ;;  %v2374_v7 = vpop.eup %2373  ;;  %2393 = vrcp.f32 %v1216_v2  ;;  %1539 = vmatprep.mubr.f32.mxu0 %v1309_v45  ;;  %v1325_v3 = vmul.f32 %v2372_v63, %v4115_v37  ;;  %v4122_v2 = vld [vmem:[#allocation64_spill] sm:$0xff] }
 0x1cc   : > { %1684 = vmatprep.mubr.f32.mxu1 %v1313_v25  ;;  %v2376_v47 = vpop.eup %2375  ;;  %2395 = vrcp.f32 %v1218_v6  ;;  %v1329_v60 = vmul.f32 %v2374_v7, %v4116_v27  ;;  %v4123_v25 = vld [vmem:[#allocation8_spill] sm:$0xff] }
 0x1cd   : > { %v2378_v24 = vpop.eup %2377  ;;  %2397 = vrcp.f32 %v1220_v34  ;;  %v1224_v58 = vadd.f32 1.0, %v2376_v47 }
 0x1ce   : > { %v2380_v38 = vpop.eup %2379  ;;  %1540 = vmatmul.mubr.f32.gmra.mrb[52].mxu0 %v1307_v61  ;;  %2399 = vrcp.f32 %v1222_v13  ;;  %v1333_v57 = vmul.f32 %v2378_v24, %v4119_v43 }
 0x1cf   : > { %1685 = vmatmul.mubr.f32.gmra.mrb[52].mxu1 %v1311_v40  ;;  %v2382_v56 = vpop.eup %2381  ;;  %v1223_v36 = vadd.f32 1.0, %v2380_v38  ;;  %1544 = vmatprep.mubr.f32.mxu0 %v1317_v35 }
 0x1d0   : > { %1689 = vmatprep.mubr.f32.mxu1 %v1321_v28  ;;  %v2384_v52 = vpop.eup %2383  ;;  %v1225_v51 = vadd.f32 1.0, %v2382_v56 }
 0x1d1   : > { %v2386_v12 = vpop.eup %2385  ;;  %2401 = vrcp.f32 %v1223_v36  ;;  %v1337_v26 = vmul.f32 %v2384_v52, %v4120_v14 }
 0x1d2   : > { %v2388_v54 = vpop.eup %2387  ;;  %2403 = vrcp.f32 %v1225_v51  ;;  %1545 = vmatmul.mubr.f32.gmra.mrb[54].mxu0 %v1315_v29  ;;  %v1327_v10 = vmul.f32 %v2386_v12, %v4122_v2 }
 0x1d3   : > { %1690 = vmatmul.mubr.f32.gmra.mrb[54].mxu1 %v1319_v9  ;;  %v2390_v41 = vpop.eup %2389  ;;  %2405 = vrcp.f32 %v1224_v58  ;;  %1549 = vmatprep.mubr.f32.mxu0 %v1325_v3  ;;  %v1331_v18 = vmul.f32 %v2388_v54, %v4123_v25 }
 0x1d4   : > { %1694 = vmatprep.mubr.f32.mxu1 %v1329_v60  ;;  %v2392_v30 = vpop.eup %2391  ;;  %v1341_v45 = vmul.f32 %v2390_v41, %v3675_v16 }
 0x1d5   : > { %v2394_v42 = vpop.eup %2393  ;;  %v1345_v62 = vmul.f32 %v2392_v30, %v3679_v53 }
 0x1d6   : > { %1550 = vmatmul.mubr.f32.gmra.mrb[56].mxu0 %v1323_v19  ;;  %v2396_v17 = vpop.eup %2395  ;;  %v1335_v31 = vmul.f32 %v2394_v42, %v4124_v59 }
 0x1d7   : > { %1695 = vmatmul.mubr.f32.gmra.mrb[56].mxu1 %v1327_v10  ;;  %1554 = vmatprep.mubr.f32.mxu0 %v1333_v57  ;;  %v2398_v23 = vpop.eup %2397  ;;  %v1339_v22 = vmul.f32 %v2396_v17, %v3649_v39 }
 0x1d8   : > { %1699 = vmatprep.mubr.f32.mxu1 %v1337_v26  ;;  %v2400_v55 = vpop.eup %2399  ;;  %v1343_v6 = vmul.f32 %v2398_v23, %v4125_v21 }
 0x1d9   : > { %v1347_v34 = vmul.f32 %v2400_v55, %v3699_v50 }
 0x1da   : > { %1555 = vmatmul.mubr.f32.gmra.mrb[58].mxu0 %v1331_v18 }
 0x1db   : > { %1700 = vmatmul.mubr.f32.gmra.mrb[58].mxu1 %v1335_v31  ;;  %v2402_v4 = vpop.eup %2401  ;;  %1559 = vmatprep.mubr.f32.mxu0 %v1341_v45 }
 0x1dc   : > { %1704 = vmatprep.mubr.f32.mxu1 %v1345_v62  ;;  %v2404_v46 = vpop.eup %2403  ;;  %v1349_v16 = vmul.f32 %v2402_v4, %v3729_v0  ;;  %v3828_v0 = vld [vmem:[%s3922_s4] ss:$0 sm:$0xff] }
 0x1dd   : > { %v2406_v53 = vpop.eup %2405  ;;  %v1353_v63 = vmul.f32 %v2404_v46, %v3735_v5 }
 0x1de   : > { %1560 = vmatmul.mubr.f32.gmra.mrb[60].mxu0 %v1339_v22  ;;  %v1351_v7 = vmul.f32 %v2406_v53, %v3703_v11 }
 0x1df   : > { %1705 = vmatmul.mubr.f32.gmra.mrb[60].mxu1 %v1343_v6  ;;  %1564 = vmatprep.mubr.f32.mxu0 %v1349_v16 }
 0x1e0   : > { %1709 = vmatprep.mubr.f32.mxu1 %v1353_v63 }
 0x1e2   : > { %1565 = vmatmul.mubr.f32.gmra.mrb[62].mxu0 %v1347_v34 }
 0x1e3   : > { %1710 = vmatmul.mubr.f32.gmra.mrb[62].mxu1 %v1351_v7 }
 0x256   : > { %v1853_v39 = vpop.f32.mrb[32].mxu0 }
 0x257   : > { %v1854_v32 = vpop.f32.mrb[33].mxu0 }
 0x258   : > { %v1933_v35 = vpop.f32.mrb[32].mxu1  ;;  %v1855_v5 = vadd.f32 %v1854_v32, %v1853_v39 }
 0x259   : > { %v1934_v49 = vpop.f32.mrb[33].mxu1 }
 0x25a   : > { %v1492_v28 = vadd.f32 %v1855_v5, %v3828_v0  ;;  %v1935_v50 = vadd.f32 %v1934_v49, %v1933_v35 }
 0x25c   : > { %v1637_v47 = vadd.f32 %v1935_v50, %v1492_v28 }
 0x25e   : > { %1715 = vst [vmem:[%s3833_s6] sm:$0xff] %v1637_v47 }
 0x265   : > { %v1856_v11 = vpop.f32.mrb[34].mxu0 }
 0x266   : > { %v1936_v13 = vpop.f32.mrb[34].mxu1  ;;  %v1857_v15 = vpop.f32.mrb[35].mxu0 }
 0x267   : > { %v1858_v44 = vadd.f32 %v1857_v15, %v1856_v11  ;;  %v1937_v61 = vpop.f32.mrb[35].mxu1 }
 0x268   : > { %v1938_v8 = vadd.f32 %v1937_v61, %v1936_v13 }
 0x269   : > { %v1497_v48 = vadd.f32 %v1858_v44, %v3828_v0 }
 0x26b   : > { %v1642_v40 = vadd.f32 %v1938_v8, %v1497_v48 }
 0x26d   : > { %1716 = vst [vmem:[%s3833_s6 + $0x8] sm:$0xff] %v1642_v40 }
 0x273   : > { %v1859_v24 = vpop.f32.mrb[36].mxu0 }
 0x274   : > { %v1939_v38 = vpop.f32.mrb[36].mxu1  ;;  %v1860_v56 = vpop.f32.mrb[37].mxu0 }
 0x275   : > { %v1861_v58 = vadd.f32 %v1860_v56, %v1859_v24  ;;  %v1940_v36 = vpop.f32.mrb[37].mxu1 }
 0x276   : > { %v1941_v37 = vadd.f32 %v1940_v36, %v1939_v38 }
 0x277   : > { %v1502_v3 = vadd.f32 %v1861_v58, %v3828_v0 }
 0x279   : > { %v1647_v27 = vadd.f32 %v1941_v37, %v1502_v3 }
 0x27b   : > { %1717 = vst [vmem:[%s3833_s6 + $0x10] sm:$0xff] %v1647_v27  ;;  %v1862_v60 = vpop.f32.mrb[38].mxu0 }
 0x27c   : > { %v1863_v52 = vpop.f32.mrb[39].mxu0 }
 0x27d   : > { %v1942_v51 = vpop.f32.mrb[38].mxu1  ;;  %v1864_v1 = vadd.f32 %v1863_v52, %v1862_v60 }
 0x27e   : > { %v1943_v29 = vpop.f32.mrb[39].mxu1 }
 0x27f   : > { %v1507_v33 = vadd.f32 %v1864_v1, %v3828_v0  ;;  %v1944_v9 = vadd.f32 %v1943_v29, %v1942_v51 }
 0x281   : > { %v1652_v12 = vadd.f32 %v1944_v9, %v1507_v33 }
 0x283   : > { %1718 = vst [vmem:[%s3833_s6 + $0x18] sm:$0xff] %v1652_v12 }
 0x289   : > { %v1865_v54 = vpop.f32.mrb[40].mxu0 }
 0x28a   : > { %v1945_v41 = vpop.f32.mrb[40].mxu1  ;;  %v1866_v43 = vpop.f32.mrb[41].mxu0 }
 0x28b   : > { %v1946_v57 = vpop.f32.mrb[41].mxu1  ;;  %v1867_v14 = vadd.f32 %v1866_v43, %v1865_v54 }
 0x28c   : > { %v1947_v26 = vadd.f32 %v1946_v57, %v1945_v41 }
 0x28d   : > { %v1512_v30 = vadd.f32 %v1867_v14, %v3828_v0  ;;  %v1868_v20 = vpop.f32.mrb[42].mxu0 }
 0x28e   : > { %v1948_v19 = vpop.f32.mrb[42].mxu1  ;;  %v1869_v2 = vpop.f32.mrb[43].mxu0 }
 0x28f   : > { %v1949_v10 = vpop.f32.mrb[43].mxu1  ;;  %v1657_v42 = vadd.f32 %v1947_v26, %v1512_v30  ;;  %v1870_v17 = vadd.f32 %v1869_v2, %v1868_v20 }
 0x290   : > { %v1950_v45 = vadd.f32 %v1949_v10, %v1948_v19 }
 0x291   : > { %1719 = vst [vmem:[%s3833_s6 + $0x20] sm:$0xff] %v1657_v42  ;;  %v1517_v62 = vadd.f32 %v1870_v17, %v3828_v0  ;;  %v1871_v23 = vpop.f32.mrb[44].mxu0 }
 0x292   : > { %v1951_v25 = vpop.f32.mrb[44].mxu1  ;;  %v1872_v18 = vpop.f32.mrb[45].mxu0 }
 0x293   : > { %v1952_v59 = vpop.f32.mrb[45].mxu1  ;;  %v1662_v31 = vadd.f32 %v1950_v45, %v1517_v62  ;;  %v1873_v55 = vadd.f32 %v1872_v18, %v1871_v23 }
 0x294   : > { %v1953_v4 = vadd.f32 %v1952_v59, %v1951_v25 }
 0x295   : > { %1720 = vst [vmem:[%s3833_s6 + $0x28] sm:$0xff] %v1662_v31  ;;  %v1522_v46 = vadd.f32 %v1873_v55, %v3828_v0  ;;  %v1874_v22 = vpop.f32.mrb[46].mxu0 }
 0x296   : > { %v1954_v21 = vpop.f32.mrb[46].mxu1  ;;  %v1875_v6 = vpop.f32.mrb[47].mxu0 }
 0x297   : > { %v1955_v16 = vpop.f32.mrb[47].mxu1  ;;  %v1667_v53 = vadd.f32 %v1953_v4, %v1522_v46  ;;  %v1876_v63 = vadd.f32 %v1875_v6, %v1874_v22 }
 0x298   : > { %v1956_v34 = vadd.f32 %v1955_v16, %v1954_v21 }
 0x299   : > { %1721 = vst [vmem:[%s3833_s6 + $0x30] sm:$0xff] %v1667_v53  ;;  %v1527_v7 = vadd.f32 %v1876_v63, %v3828_v0  ;;  %v1877_v39 = vpop.f32.mrb[48].mxu0 }
 0x29a   : > { %v1957_v32 = vpop.f32.mrb[48].mxu1  ;;  %v1878_v35 = vpop.f32.mrb[49].mxu0 }
 0x29b   : > { %v1958_v5 = vpop.f32.mrb[49].mxu1  ;;  %v1672_v49 = vadd.f32 %v1956_v34, %v1527_v7  ;;  %v1879_v28 = vadd.f32 %v1878_v35, %v1877_v39 }
 0x29c   : > { %v1959_v50 = vadd.f32 %v1958_v5, %v1957_v32 }
 0x29d   : > { %1722 = vst [vmem:[%s3833_s6 + $0x38] sm:$0xff] %v1672_v49  ;;  %v1532_v47 = vadd.f32 %v1879_v28, %v3828_v0  ;;  %v1880_v11 = vpop.f32.mrb[50].mxu0 }
 0x29e   : > { %v1960_v13 = vpop.f32.mrb[50].mxu1  ;;  %v1881_v15 = vpop.f32.mrb[51].mxu0 }
 0x29f   : > { %v1961_v44 = vpop.f32.mrb[51].mxu1  ;;  %v1677_v61 = vadd.f32 %v1959_v50, %v1532_v47  ;;  %v1882_v8 = vadd.f32 %v1881_v15, %v1880_v11 }
 0x2a0   : > { %v1962_v48 = vadd.f32 %v1961_v44, %v1960_v13 }
 0x2a1   : > { %1723 = vst [vmem:[%s3833_s6 + $0x40] sm:$0xff] %v1677_v61  ;;  %v1537_v40 = vadd.f32 %v1882_v8, %v3828_v0  ;;  %v1883_v24 = vpop.f32.mrb[52].mxu0 }
 0x2a2   : > { %v1963_v38 = vpop.f32.mrb[52].mxu1  ;;  %v1884_v56 = vpop.f32.mrb[53].mxu0 }
 0x2a3   : > { %v1964_v58 = vpop.f32.mrb[53].mxu1  ;;  %v1682_v36 = vadd.f32 %v1962_v48, %v1537_v40  ;;  %v1885_v37 = vadd.f32 %v1884_v56, %v1883_v24 }
 0x2a4   : > { %v1965_v3 = vadd.f32 %v1964_v58, %v1963_v38 }
 0x2a5   : > { %1724 = vst [vmem:[%s3833_s6 + $0x48] sm:$0xff] %v1682_v36  ;;  %v1542_v27 = vadd.f32 %v1885_v37, %v3828_v0  ;;  %v1886_v60 = vpop.f32.mrb[54].mxu0 }
 0x2a6   : > { %v1966_v52 = vpop.f32.mrb[54].mxu1  ;;  %v1887_v51 = vpop.f32.mrb[55].mxu0 }
 0x2a7   : > { %v1967_v1 = vpop.f32.mrb[55].mxu1  ;;  %v1687_v29 = vadd.f32 %v1965_v3, %v1542_v27  ;;  %v1888_v33 = vadd.f32 %v1887_v51, %v1886_v60 }
 0x2a8   : > { %v1968_v9 = vadd.f32 %v1967_v1, %v1966_v52 }
 0x2a9   : > { %1725 = vst [vmem:[%s3833_s6 + $0x50] sm:$0xff] %v1687_v29  ;;  %v1547_v12 = vadd.f32 %v1888_v33, %v3828_v0  ;;  %v1889_v54 = vpop.f32.mrb[56].mxu0 }
 0x2aa   : > { %v1969_v41 = vpop.f32.mrb[56].mxu1  ;;  %v1890_v43 = vpop.f32.mrb[57].mxu0 }
 0x2ab   : > { %v1970_v57 = vpop.f32.mrb[57].mxu1  ;;  %v1692_v14 = vadd.f32 %v1968_v9, %v1547_v12  ;;  %v1891_v26 = vadd.f32 %v1890_v43, %v1889_v54 }
 0x2ac   : > { %v1971_v30 = vadd.f32 %v1970_v57, %v1969_v41 }
 0x2ad   : > { %1726 = vst [vmem:[%s3833_s6 + $0x58] sm:$0xff] %v1692_v14  ;;  %v1552_v20 = vadd.f32 %v1891_v26, %v3828_v0  ;;  %v1892_v19 = vpop.f32.mrb[58].mxu0 }
 0x2ae   : > { %v1972_v2 = vpop.f32.mrb[58].mxu1  ;;  %v1893_v10 = vpop.f32.mrb[59].mxu0 }
 0x2af   : > { %v1973_v42 = vpop.f32.mrb[59].mxu1  ;;  %v1697_v17 = vadd.f32 %v1971_v30, %v1552_v20  ;;  %v1894_v45 = vadd.f32 %v1893_v10, %v1892_v19 }
 0x2b0   : > { %v1974_v62 = vadd.f32 %v1973_v42, %v1972_v2 }
 0x2b1   : > { %1727 = vst [vmem:[%s3833_s6 + $0x60] sm:$0xff] %v1697_v17  ;;  %v1557_v23 = vadd.f32 %v1894_v45, %v3828_v0  ;;  %v1895_v25 = vpop.f32.mrb[60].mxu0 }
 0x2b2   : > { %v1975_v18 = vpop.f32.mrb[60].mxu1  ;;  %v1896_v59 = vpop.f32.mrb[61].mxu0 }
 0x2b3   : > { %v1976_v31 = vpop.f32.mrb[61].mxu1  ;;  %v1702_v55 = vadd.f32 %v1974_v62, %v1557_v23  ;;  %v1897_v4 = vadd.f32 %v1896_v59, %v1895_v25 }
 0x2b4   : > { %v1977_v46 = vadd.f32 %v1976_v31, %v1975_v18 }
 0x2b5   : > { %1728 = vst [vmem:[%s3833_s6 + $0x68] sm:$0xff] %v1702_v55  ;;  %v1562_v22 = vadd.f32 %v1897_v4, %v3828_v0  ;;  %v1898_v21 = vpop.f32.mrb[62].mxu0 }
 0x2b6   : > { %v1978_v6 = vpop.f32.mrb[62].mxu1  ;;  %v1899_v16 = vpop.f32.mrb[63].mxu0 }
 0x2b7   : > { %v1979_v53 = vpop.f32.mrb[63].mxu1  ;;  %v1707_v63 = vadd.f32 %v1977_v46, %v1562_v22  ;;  %v1900_v34 = vadd.f32 %v1899_v16, %v1898_v21 }
 0x2b8   : > { %v1980_v7 = vadd.f32 %v1979_v53, %v1978_v6 }
 0x2b9   : > { %1729 = vst [vmem:[%s3833_s6 + $0x70] sm:$0xff] %v1707_v63  ;;  %v1567_v39 = vadd.f32 %v1900_v34, %v3828_v0 }
 0x2bb   : > { %v1712_v32 = vadd.f32 %v1980_v7, %v1567_v39 }
 0x2bd   : > { %1730 = vst [vmem:[%s3833_s6 + $0x78] sm:$0xff] %v1712_v32 }
 0x2be   : > { %2420 = shalt.err (!%p2417_p3)
}
 0x2bf   : > { %s2421_s17 = scalar_lea.hbm %s3870_s12, 2048  ;;  %s2425_s13 = scalar_lea.hbm %s3923_s5, 4096 }
 0x2c0   : > { %p2422_p4 = scmp.ne.s32.totalorder %s3870_s12, %s2421_s17  ;;  %p2426_p9 = scmp.lt.u32.totalorder %s3870_s12, %s3923_s5 }
 0x2c1   : > { %p2427_p10 = scmp.lt.u32.totalorder %s2425_s13, %s2421_s17  ;;  %p2429_p12 = scmp.lt.u32.totalorder %s2421_s17, %s3870_s12 }
 0x2c2   : > { %p2423_p7 = pnand %p2422_p4, %p2543_p5 }
 0x2c3   : > { %p2428_p11 = por %p2427_p10, %p2426_p9 }
 0x2c4   : > { %p2424_p8 = pneg %p2423_p7 }
 0x2c5   : > { %p2430_p13 = por %p2429_p12, %p2428_p11 }
 0x2c7   : > { %p2431_p0 = pnand %p2430_p13, %p2424_p8 }
 0x2c9   : > { %2434 = shalt.err (!%p2431_p0)
}
 0x2ca   : > { %s2473_s6 = smov 128   ;;  %s2474_s7 = smov 8  }
 0x2cb   : > { %2109 = dma.vmem_to_hbm [thread:$0]  (%p2543_p5), %s3872_s26, 2048, %s3870_s12, %s3877_s14, %s2473_s6, %s2473_s6, %s2474_s7  }
 0x2cc PF: > { %p2115_p1 = scmp.ge.s32.totalorder %s2469_s21, 2  ;;  %s1760_s8 = sand.u32 1, %s2457_s18  }
 0x2cd   : > { %s1761_s11 = scalar_lea.sflag [#allocation3], %s1760_s8 }
 0x2ce   : > { %p2112_p2 = pnand %p2115_p1, %p2547_p6 }
 0x2d0   : > { %2452 = dma.done.wait (!%p2112_p2), %s1761_s11, 2048  }
 0x2d1   : > { %2454 = vsyncadd (!%p2112_p2), %s1761_s11, 4294965248  ;;  %p15_p3 = scmp.ge.s32.totalorder %s2530_s24, 4   ;;  %s4126_s18 = smov %s2461_s19 }
 0x2d2   : > { %s4127_s19 = smov %s2465_s20  ;;  %s4128_s20 = smov %s2541_s27 }
 0x2d3   : > { %s4129_s21 = smov %s2530_s24  ;;  %17 = sbr.rel (!%p15_p3) target bundleno = 3 (0x3), region = 75 }
 0x2da   :  { %1766 = vsyncpa [#allocation3], 1 }
 0x2db   :  { %1768 = vsyncpa [#allocation3 + $0x1], 1 }

</bundles_post_ra>
